<compile_context>
chip_gen: v7x
topology: tpu7x:2x2x1
jax: 0.10.0
libtpu: 0.0.40
codegen_flags: <defaults>
</compile_context>

<pallas_src>
import jax
import jax.numpy as jnp
from jax.experimental import pallas as pl
from jax.experimental.pallas import tpu as pltpu

ACTION_DIM = 2
MLP_HIDDEN_DIM = 512


def actor_mlp_kernel(x_ref, w1_ref, b1_ref, w2_ref, b2_ref, w3_ref, b3_ref,
                     w4_ref, b4_ref, o_ref):
    """Fused 4-layer MLP (3x ReLU + final Tanh) on one row tile.

    Matmul operands are bf16 (MXU-native); accumulation, bias, ReLU and tanh
    are f32 on the VPU/EUP.  Output tile is written in o_ref.dtype (bf16).
    """
    h = jnp.dot(x_ref[...], w1_ref[...], preferred_element_type=jnp.float32) + b1_ref[...]
    h = jnp.maximum(h, 0.0).astype(jnp.bfloat16)
    h = jnp.dot(h, w2_ref[...], preferred_element_type=jnp.float32) + b2_ref[...]
    h = jnp.maximum(h, 0.0).astype(jnp.bfloat16)
    h = jnp.dot(h, w3_ref[...], preferred_element_type=jnp.float32) + b3_ref[...]
    h = jnp.maximum(h, 0.0).astype(jnp.bfloat16)
    a = jnp.dot(h, w4_ref[...], preferred_element_type=jnp.float32) + b4_ref[...]
    o_ref[...] = jnp.tanh(a).astype(o_ref.dtype)


def _round_up(x, m):
    return ((x + m - 1) // m) * m


def _device_kind():
    try:
        return jax.devices()[0].device_kind.lower()
    except Exception:  # pragma: no cover - defensive, e.g. odd backends
        return ""


def _pick_row_tile(m, kind):
    """Generation-aware row-tile cap."""
    if "v5" in kind:
        # v5e MXU is 4x128x128: 128 rows already fill the systolic dimension.
        return 256 if m >= 512 else 128
    # v6e / v7x: 2x256x256 MXU -> favour >=256 rows per tile when possible.
    if m >= 4096:
        return 1024
    if m >= 2048:
        return 512
    if m >= 256:
        return 256
    return 128


def prepare_params(params):
    """One-time pad (to 128-lane multiples) + bf16 cast of the MLP weights.

    Call this ONCE and reuse the result across rollout steps; it removes the
    per-call weight re-cast/re-pad prologue that dominated small-batch calls.
    """
    F, H = params["w1"].shape
    A = params["w4"].shape[1]
    F_pad = _round_up(F, 128)
    A_pad = _round_up(A, 128)
    prepped = {
        "w1": jnp.pad(params["w1"], ((0, F_pad - F), (0, 0))).astype(jnp.bfloat16),
        "w2": params["w2"].astype(jnp.bfloat16),
        "w3": params["w3"].astype(jnp.bfloat16),
        "w4": jnp.pad(params["w4"], ((0, 0), (0, A_pad - A))).astype(jnp.bfloat16),
        "b1": params["b1"].astype(jnp.float32),
        "b2": params["b2"].astype(jnp.float32),
        "b3": params["b3"].astype(jnp.float32),
        "b4": jnp.pad(params["b4"], ((0, 0), (0, A_pad - A))).astype(jnp.float32),
        "in_dim": int(F),
        "action_dim": int(A),
        "prepared": True,
    }
    return prepped


def actor_forward(observation, params, graph=None, *, tm=None):
    """observation: (..., in_dim) -> actions (..., ACTION_DIM).  `graph` unused."""
    del graph  # unused by the PyTorch forward as well

    if not params.get("prepared", False):
        # Convenience path; for best performance call prepare_params() once
        # outside the rollout loop and pass the prepared dict.
        params = prepare_params(params)

    lead = observation.shape[:-1]
    F = params["in_dim"]
    A = params["action_dim"]
    F_pad, H = params["w1"].shape
    A_pad = params["w4"].shape[1]
    assert observation.shape[-1] == F

    M = 1
    for d in lead:
        M *= d

    kind = _device_kind()
    if tm is None:
        tm = _pick_row_tile(M, kind)
        if "v7" in kind and M > 128:
            # v7x has 2 TensorCores; guarantee >=2 "parallel" grid steps so
            # both cores get a share of the row tiles.
            tm = min(tm, _round_up(pl.cdiv(M, 2), 128))
    M_pad = _round_up(M, tm)

    # Rows/feature lanes are zero-padded; cast x to bf16 BEFORE padding so the
    # pad op only moves half the bytes.
    x = observation.reshape(M, F).astype(jnp.bfloat16)
    x = jnp.pad(x, ((0, M_pad - M), (0, F_pad - F)))

    w1, w2, w3, w4 = params["w1"], params["w2"], params["w3"], params["w4"]
    b1, b2, b3, b4 = params["b1"], params["b2"], params["b3"], params["b4"]

    # Cost hint so XLA can schedule the surrounding cast/pad/slice ops around
    # the kernel (most visible in the small-M latency-bound rollout case).
    flops = 2 * M_pad * (F_pad * H + H * H + H * H + H * A_pad)
    bytes_accessed = (
        M_pad * F_pad * 2                              # x (bf16)
        + (F_pad * H + 2 * H * H + H * A_pad) * 2      # weights (bf16)
        + (3 * H + A_pad) * 4                          # biases (f32)
        + M_pad * A_pad * 2)                           # out (bf16)
    cost = pl.CostEstimate(flops=flops,
                           transcendentals=M_pad * A_pad,
                           bytes_accessed=bytes_accessed)

    # Per-step footprint at tm=1024 is ~9-10 MiB (in/out double-buffered +
    # resident weights + activation scratch); bump the scoped VMEM limit only
    # in that case, otherwise keep defaults.
    vmem_limit = (48 << 20) if tm >= 1024 else None

    out = pl.pallas_call(
        actor_mlp_kernel,
        out_shape=jax.ShapeDtypeStruct((M_pad, A_pad), jnp.bfloat16),
        grid_spec=pltpu.PrefetchScalarGridSpec(
            num_scalar_prefetch=0,
            grid=(M_pad // tm,),
            in_specs=[
                pl.BlockSpec((tm, F_pad), lambda i: (i, 0)),   # x row tile
                pl.BlockSpec((F_pad, H), lambda i: (0, 0)),    # w1 (K padded to 128)
                pl.BlockSpec((1, H), lambda i: (0, 0)),        # b1
                pl.BlockSpec((H, H), lambda i: (0, 0)),        # w2
                pl.BlockSpec((1, H), lambda i: (0, 0)),        # b2
                pl.BlockSpec((H, H), lambda i: (0, 0)),        # w3
                pl.BlockSpec((1, H), lambda i: (0, 0)),        # b3
                pl.BlockSpec((H, A_pad), lambda i: (0, 0)),    # w4 (N padded to 128)
                pl.BlockSpec((1, A_pad), lambda i: (0, 0)),    # b4
            ],
            out_specs=pl.BlockSpec((tm, A_pad), lambda i: (i, 0)),
        ),
        compiler_params=pltpu.CompilerParams(
            dimension_semantics=("parallel",),
            vmem_limit_bytes=vmem_limit),
        cost_estimate=cost,
    )(x, w1, b1, w2, b2, w3, b3, w4, b4)

    # Keep the [:M, :A] slice adjacent to the call: padded rows contain
    # tanh(bias) garbage and padded lanes are meaningless.
    out = out[:M, :A].astype(jnp.float32)
    return out.reshape(*lead, A)


def init_actor_params(key, in_dim, hidden=MLP_HIDDEN_DIM):
    """Deterministic PyTorch-style Linear init: U(-1/sqrt(fan_in), 1/sqrt(fan_in))."""
    dims = [(in_dim, hidden), (hidden, hidden), (hidden, hidden), (hidden, ACTION_DIM)]
    params = {}
    for idx, (fi, fo) in enumerate(dims, start=1):
        key, kw, kb = jax.random.split(key, 3)
        bound = 1.0 / jnp.sqrt(jnp.float32(fi))
        params[f"w{idx}"] = jax.random.uniform(kw, (fi, fo), jnp.float32, -bound, bound)
        params[f"b{idx}"] = jax.random.uniform(kb, (1, fo), jnp.float32, -bound, bound)
    return params


def actor_forward_ref(observation, params):
    """Pure-JAX f32 reference matching the PyTorch forward."""
    F = observation.shape[-1]
    h = observation.reshape(-1, F).astype(jnp.float32)
    h = jnp.maximum(h @ params["w1"] + params["b1"], 0.0)
    h = jnp.maximum(h @ params["w2"] + params["b2"], 0.0)
    h = jnp.maximum(h @ params["w3"] + params["b3"], 0.0)
    a = jnp.tanh(h @ params["w4"] + params["b4"])
    return a.reshape(*observation.shape[:-1], ACTION_DIM)


if __name__ == "__main__":
    # Small shapes consistent with the module: batch=2, n_agents=8, in_dim=30.
    B, N_AGENTS, IN_DIM = 2, 8, 30

    key = jax.random.PRNGKey(0)
    k_obs, k_par = jax.random.split(key)
    observation = jax.random.normal(k_obs, (B, N_AGENTS, IN_DIM), jnp.float32)
    raw_params = init_actor_params(k_par, IN_DIM)
    graph = None  # unused by the forward pass (kept for signature parity)

    # One-time weight pad/cast, hoisted out of the per-call path.
    params = prepare_params(raw_params)

    act = actor_forward(observation, params, graph=graph)
    act = jax.block_until_ready(act)

    act_ref = actor_forward_ref(observation, raw_params)
    assert act.shape == (B, N_AGENTS, ACTION_DIM)
    # bf16 MXU operands / bf16 output with f32 accumulation -> ~1% rel. error budget.
    assert jnp.allclose(act, act_ref, atol=3e-2, rtol=3e-2), float(
        jnp.max(jnp.abs(act - act_ref)))

    print("KERNEL_OK")
</pallas_src>

<mosaic_0001>
module attributes {stable_mosaic.version = 11 : i64} {
  func.func @actor_mlp_kernel(%arg0: i32, %arg1: memref<128x128xbf16, #tpu.memory_space<vmem>>, %arg2: memref<128x512xbf16, #tpu.memory_space<vmem>>, %arg3: memref<1x512xf32, #tpu.memory_space<vmem>>, %arg4: memref<512x512xbf16, #tpu.memory_space<vmem>>, %arg5: memref<1x512xf32, #tpu.memory_space<vmem>>, %arg6: memref<512x512xbf16, #tpu.memory_space<vmem>>, %arg7: memref<1x512xf32, #tpu.memory_space<vmem>>, %arg8: memref<512x128xbf16, #tpu.memory_space<vmem>>, %arg9: memref<1x128xf32, #tpu.memory_space<vmem>>, %arg10: memref<128x128xbf16, #tpu.memory_space<vmem>>) attributes {dimension_semantics = [#tpu.dimension_semantics<parallel>], iteration_bounds = array<i64: 1>, scalar_prefetch = 0 : i64, scratch_operands = 0 : i64, tpu.core_type = #tpu.core_type<tc>, window_params = [{transform_indices = @transform_0, window_bounds = array<i64: 128, 128>}, {pipeline_mode = #tpu.pipeline_mode<synchronous>, transform_indices = @transform_1, window_bounds = array<i64: 128, 512>}, {pipeline_mode = #tpu.pipeline_mode<synchronous>, transform_indices = @transform_2, window_bounds = array<i64: 1, 512>}, {pipeline_mode = #tpu.pipeline_mode<synchronous>, transform_indices = @transform_3, window_bounds = array<i64: 512, 512>}, {pipeline_mode = #tpu.pipeline_mode<synchronous>, transform_indices = @transform_4, window_bounds = array<i64: 1, 512>}, {pipeline_mode = #tpu.pipeline_mode<synchronous>, transform_indices = @transform_5, window_bounds = array<i64: 512, 512>}, {pipeline_mode = #tpu.pipeline_mode<synchronous>, transform_indices = @transform_6, window_bounds = array<i64: 1, 512>}, {pipeline_mode = #tpu.pipeline_mode<synchronous>, transform_indices = @transform_7, window_bounds = array<i64: 512, 128>}, {pipeline_mode = #tpu.pipeline_mode<synchronous>, transform_indices = @transform_8, window_bounds = array<i64: 1, 128>}, {transform_indices = @transform_9, window_bounds = array<i64: 128, 128>}]} {
    %c0 = arith.constant 0 : index
    %c0_0 = arith.constant 0 : index
    %0 = vector.load %arg1[%c0, %c0_0] : memref<128x128xbf16, #tpu.memory_space<vmem>>, vector<128x128xbf16>
    %c0_1 = arith.constant 0 : index
    %c0_2 = arith.constant 0 : index
    %1 = vector.load %arg2[%c0_1, %c0_2] : memref<128x512xbf16, #tpu.memory_space<vmem>>, vector<128x512xbf16>
    %cst = arith.constant dense<0.000000e+00> : vector<128x512xf32>
    %2 = tpu.matmul %0, %1, %cst {dimension_numbers = #tpu.dot_dimension_numbers<[1], [0], [0], [1], [0, 0, 1, 1], [], []>} : vector<128x128xbf16>, vector<128x512xbf16>, vector<128x512xf32> -> vector<128x512xf32>
    %c0_3 = arith.constant 0 : index
    %c0_4 = arith.constant 0 : index
    %3 = vector.load %arg3[%c0_3, %c0_4] : memref<1x512xf32, #tpu.memory_space<vmem>>, vector<1x512xf32>
    %4 = vector.broadcast %3 : vector<1x512xf32> to vector<128x512xf32>
    %5 = arith.addf %2, %4 : vector<128x512xf32>
    %cst_5 = arith.constant 0.000000e+00 : f32
    %6 = vector.broadcast %cst_5 : f32 to vector<128x512xf32>
    %7 = arith.maximumf %5, %6 : vector<128x512xf32>
    %8 = arith.truncf %7 : vector<128x512xf32> to vector<128x512xbf16>
    %c0_6 = arith.constant 0 : index
    %c0_7 = arith.constant 0 : index
    %9 = vector.load %arg4[%c0_6, %c0_7] : memref<512x512xbf16, #tpu.memory_space<vmem>>, vector<512x512xbf16>
    %cst_8 = arith.constant dense<0.000000e+00> : vector<128x512xf32>
    %10 = tpu.matmul %8, %9, %cst_8 {dimension_numbers = #tpu.dot_dimension_numbers<[1], [0], [0], [1], [0, 0, 1, 1], [], []>} : vector<128x512xbf16>, vector<512x512xbf16>, vector<128x512xf32> -> vector<128x512xf32>
    %c0_9 = arith.constant 0 : index
    %c0_10 = arith.constant 0 : index
    %11 = vector.load %arg5[%c0_9, %c0_10] : memref<1x512xf32, #tpu.memory_space<vmem>>, vector<1x512xf32>
    %12 = vector.broadcast %11 : vector<1x512xf32> to vector<128x512xf32>
    %13 = arith.addf %10, %12 : vector<128x512xf32>
    %cst_11 = arith.constant 0.000000e+00 : f32
    %14 = vector.broadcast %cst_11 : f32 to vector<128x512xf32>
    %15 = arith.maximumf %13, %14 : vector<128x512xf32>
    %16 = arith.truncf %15 : vector<128x512xf32> to vector<128x512xbf16>
    %c0_12 = arith.constant 0 : index
    %c0_13 = arith.constant 0 : index
    %17 = vector.load %arg6[%c0_12, %c0_13] : memref<512x512xbf16, #tpu.memory_space<vmem>>, vector<512x512xbf16>
    %cst_14 = arith.constant dense<0.000000e+00> : vector<128x512xf32>
    %18 = tpu.matmul %16, %17, %cst_14 {dimension_numbers = #tpu.dot_dimension_numbers<[1], [0], [0], [1], [0, 0, 1, 1], [], []>} : vector<128x512xbf16>, vector<512x512xbf16>, vector<128x512xf32> -> vector<128x512xf32>
    %c0_15 = arith.constant 0 : index
    %c0_16 = arith.constant 0 : index
    %19 = vector.load %arg7[%c0_15, %c0_16] : memref<1x512xf32, #tpu.memory_space<vmem>>, vector<1x512xf32>
    %20 = vector.broadcast %19 : vector<1x512xf32> to vector<128x512xf32>
    %21 = arith.addf %18, %20 : vector<128x512xf32>
    %cst_17 = arith.constant 0.000000e+00 : f32
    %22 = vector.broadcast %cst_17 : f32 to vector<128x512xf32>
    %23 = arith.maximumf %21, %22 : vector<128x512xf32>
    %24 = arith.truncf %23 : vector<128x512xf32> to vector<128x512xbf16>
    %c0_18 = arith.constant 0 : index
    %c0_19 = arith.constant 0 : index
    %25 = vector.load %arg8[%c0_18, %c0_19] : memref<512x128xbf16, #tpu.memory_space<vmem>>, vector<512x128xbf16>
    %cst_20 = arith.constant dense<0.000000e+00> : vector<128x128xf32>
    %26 = tpu.matmul %24, %25, %cst_20 {dimension_numbers = #tpu.dot_dimension_numbers<[1], [0], [0], [1], [0, 0, 1, 1], [], []>} : vector<128x512xbf16>, vector<512x128xbf16>, vector<128x128xf32> -> vector<128x128xf32>
    %c0_21 = arith.constant 0 : index
    %c0_22 = arith.constant 0 : index
    %27 = vector.load %arg9[%c0_21, %c0_22] : memref<1x128xf32, #tpu.memory_space<vmem>>, vector<1x128xf32>
    %28 = vector.broadcast %27 : vector<1x128xf32> to vector<128x128xf32>
    %29 = arith.addf %26, %28 : vector<128x128xf32>
    %30 = math.tanh %29 : vector<128x128xf32>
    %31 = arith.truncf %30 : vector<128x128xf32> to vector<128x128xbf16>
    %c0_23 = arith.constant 0 : index
    %c0_24 = arith.constant 0 : index
    %32 = vector.load %arg10[%c0_23, %c0_24] : memref<128x128xbf16, #tpu.memory_space<vmem>>, vector<128x128xbf16>
    tpu.vector_store %arg10[%c0_23, %c0_24], %31 {strides = array<i32>} : memref<128x128xbf16, #tpu.memory_space<vmem>>, vector<128x128xbf16>,
    return
  }
  func.func @transform_0(%arg0: i32) -> (i32, i32) {
    %c0_i32 = arith.constant 0 : i32
    %c0_i32_0 = arith.constant 0 : i32
    return %arg0, %c0_i32 : i32, i32
  }
  func.func @transform_1(%arg0: i32) -> (i32, i32) {
    %c0_i32 = arith.constant 0 : i32
    %c0_i32_0 = arith.constant 0 : i32
    %c0_i32_1 = arith.constant 0 : i32
    return %c0_i32, %c0_i32_0 : i32, i32
  }
  func.func @transform_2(%arg0: i32) -> (i32, i32) {
    %c0_i32 = arith.constant 0 : i32
    %c0_i32_0 = arith.constant 0 : i32
    %c0_i32_1 = arith.constant 0 : i32
    return %c0_i32, %c0_i32_0 : i32, i32
  }
  func.func @transform_3(%arg0: i32) -> (i32, i32) {
    %c0_i32 = arith.constant 0 : i32
    %c0_i32_0 = arith.constant 0 : i32
    %c0_i32_1 = arith.constant 0 : i32
    return %c0_i32, %c0_i32_0 : i32, i32
  }
  func.func @transform_4(%arg0: i32) -> (i32, i32) {
    %c0_i32 = arith.constant 0 : i32
    %c0_i32_0 = arith.constant 0 : i32
    %c0_i32_1 = arith.constant 0 : i32
    return %c0_i32, %c0_i32_0 : i32, i32
  }
  func.func @transform_5(%arg0: i32) -> (i32, i32) {
    %c0_i32 = arith.constant 0 : i32
    %c0_i32_0 = arith.constant 0 : i32
    %c0_i32_1 = arith.constant 0 : i32
    return %c0_i32, %c0_i32_0 : i32, i32
  }
  func.func @transform_6(%arg0: i32) -> (i32, i32) {
    %c0_i32 = arith.constant 0 : i32
    %c0_i32_0 = arith.constant 0 : i32
    %c0_i32_1 = arith.constant 0 : i32
    return %c0_i32, %c0_i32_0 : i32, i32
  }
  func.func @transform_7(%arg0: i32) -> (i32, i32) {
    %c0_i32 = arith.constant 0 : i32
    %c0_i32_0 = arith.constant 0 : i32
    %c0_i32_1 = arith.constant 0 : i32
    return %c0_i32, %c0_i32_0 : i32, i32
  }
  func.func @transform_8(%arg0: i32) -> (i32, i32) {
    %c0_i32 = arith.constant 0 : i32
    %c0_i32_0 = arith.constant 0 : i32
    %c0_i32_1 = arith.constant 0 : i32
    return %c0_i32, %c0_i32_0 : i32, i32
  }
  func.func @transform_9(%arg0: i32) -> (i32, i32) {
    %c0_i32 = arith.constant 0 : i32
    %c0_i32_0 = arith.constant 0 : i32
    return %arg0, %c0_i32 : i32, i32
  }
}

</mosaic_0001>

<bundles_post_ra>
// kernel: tpu_custom_call.1
= control target key start
LH: loop header
LB: loop body
LE: loop exit
PB: predicated region body
PF: predicated region fallthrough
CT: control target
= control target key end

     0   :  { %14 = vsyncpa [#allocation3], 0  ;;  %s5958_s0 = inlined_call_operand.hbm [shape: bf16[128,128], index: 0, kind: input, shape index: {}]   ;;  %s5959_s1 = inlined_call_operand.hbm [shape: bf16[128,512], index: 1, kind: input, shape index: {}]   ;;  %s5960_s2 = inlined_call_operand.vmem [shape: f32[1,512], index: 2, kind: input, shape index: {}]   ;;  %s5961_s3 = inlined_call_operand.hbm [shape: bf16[512,512], index: 3, kind: input, shape index: {}]   ;;  %s5962_s4 = inlined_call_operand.vmem [shape: f32[1,512], index: 4, kind: input, shape index: {}]   ;;  %s5963_s5 = inlined_call_operand.hbm [shape: bf16[512,512], index: 5, kind: input, shape index: {}]   ;;  %s5964_s6 = inlined_call_operand.vmem [shape: f32[1,512], index: 6, kind: input, shape index: {}]   ;;  %s5965_s7 = inlined_call_operand.hbm [shape: bf16[512,128], index: 7, kind: input, shape index: {}]   ;;  %s5966_s8 = inlined_call_operand.vmem [shape: f32[1,128], index: 8, kind: input, shape index: {}]   ;;  %s5967_s9 = inlined_call_operand.hbm [shape: bf16[128,128], index: 9, kind: output, shape index: {}]  }
   0x1   :  { %15 = vsyncpa [#allocation6], 0 }
   0x2   :  { %16 = vsyncpa [#allocation9], 0 }
   0x3   :  { %17 = vsyncpa [#allocation4], 0  ;;  %s5397_s30 = smov [#allocation5]   ;;  %s5257_s13 = scalar_lea.hbm %s5959_s1, 4096 }
   0x4   :  { %s35_s10 = sshll.u32 %s5397_s30, 4  ;;  %p5258_p0 = scmp.ne.s32.totalorder %s5959_s1, %s5257_s13  ;;  %s36_s10 = int_to_ptr.vmem [resolvable:$true] %s35_s10 }
   0x5   :  { %p5261_p1 = scmp.lt.u32.totalorder %s5257_s13, %s5959_s1 }
   0x7   :  { %p5263_p2 = pnand %p5261_p1, %p5258_p0 }
   0x9   :  { %5266 = shalt.err (!%p5263_p2)
}
   0xa   :  { %s5267_s18 = scalar_lea.vmem %s36_s10, 4096  ;;  %p5272_p4 = scmp.lt.s32.totalorder %s36_s10, %s36_s10 }
   0xb   :  { %p5268_p3 = scmp.ne.s32.totalorder %s36_s10, %s5267_s18  ;;  %p5273_p5 = scmp.lt.s32.totalorder %s5267_s18, %s5267_s18 }
   0xd   :  { %p5274_p6 = por %p5273_p5, %p5272_p4 }
   0xf   :  { %p5275_p7 = pnand %p5274_p6, %p5268_p3 }
  0x11   :  { %5278 = shalt.err (!%p5275_p7)
}
  0x12   :  { %s5398_s19 = smov 256   ;;  %s5399_s20 = smov 16  }
  0x13   :  { %41 = dma.hbm_to_vmem [thread:$0]  %s5959_s1, 4096, %s36_s10, [#allocation6], %s5398_s19, %s5398_s19, %s5399_s20  }
  0x14   :  { %s5400_s23 = smov [#allocation8]   ;;  %s5401_s25 = smov [#allocation2]  }
  0x15   :  { %s63_s24 = sshll.u32 %s5400_s23, 4  ;;  %s23_s26 = sshll.u32 %s5401_s25, 4  ;;  %s64_s24 = int_to_ptr.vmem [resolvable:$true] %s63_s24  ;;  %s24_s26 = int_to_ptr.vmem [resolvable:$true] %s23_s26 }
  0x16   :  { %s5279_s29 = scalar_lea.hbm %s5963_s5, 16384 }
  0x17   :  { %p5280_p8 = scmp.ne.s32.totalorder %s5963_s5, %s5279_s29  ;;  %p5283_p9 = scmp.lt.u32.totalorder %s5279_s29, %s5963_s5 }
  0x19   :  { %p5285_p10 = pnand %p5283_p9, %p5280_p8 }
  0x1b   :  { %5288 = shalt.err (!%p5285_p10)
}
  0x1c   :  { %s5289_s1 = scalar_lea.vmem %s64_s24, 16384  ;;  %p5294_p12 = scmp.lt.s32.totalorder %s64_s24, %s64_s24 }
  0x1d   :  { %p5290_p11 = scmp.ne.s32.totalorder %s64_s24, %s5289_s1  ;;  %p5295_p13 = scmp.lt.s32.totalorder %s5289_s1, %s5289_s1 }
  0x1f   :  { %p5296_p0 = por %p5295_p13, %p5294_p12 }
  0x21   :  { %p5297_p1 = pnand %p5296_p0, %p5290_p11 }
  0x23   :  { %5300 = shalt.err (!%p5297_p1)
}
  0x24   :  { %69 = dma.hbm_to_vmem [thread:$0]  %s5963_s5, 16384, %s64_s24, [#allocation9], %s5398_s19, %s5398_s19, %s5399_s20  }
  0x25   :  { %s5301_s17 = scalar_lea.hbm %s5958_s0, 1024 }
  0x26   :  { %p5302_p2 = scmp.ne.s32.totalorder %s5958_s0, %s5301_s17  ;;  %p5305_p3 = scmp.lt.u32.totalorder %s5301_s17, %s5958_s0 }
  0x28   :  { %p5307_p4 = pnand %p5305_p3, %p5302_p2 }
  0x2a   :  { %5310 = shalt.err (!%p5307_p4)
}
  0x2b   :  { %s5311_s25 = scalar_lea.vmem %s24_s26, 1024  ;;  %p5316_p6 = scmp.lt.s32.totalorder %s24_s26, %s24_s26 }
  0x2c   :  { %p5312_p5 = scmp.ne.s32.totalorder %s24_s26, %s5311_s25  ;;  %p5317_p7 = scmp.lt.s32.totalorder %s5311_s25, %s5311_s25 }
  0x2e   :  { %p5318_p8 = por %p5317_p7, %p5316_p6 }
  0x30   :  { %p5319_p9 = pnand %p5318_p8, %p5312_p5 }
  0x32   :  { %5322 = shalt.err (!%p5319_p9)
}
  0x33   :  { %s5402_s5 = smov 64   ;;  %s5403_s24 = smov 4  }
  0x34   :  { %29 = dma.hbm_to_vmem [thread:$0]  %s5958_s0, 1024, %s24_s26, [#allocation3], %s5402_s5, %s5402_s5, %s5403_s24  }
  0x35   :  { %s5404_s29 = smov [#allocation7]   ;;  %s5405_s11 = smov [#allocation10]  }
  0x36   :  { %s49_s30 = sshll.u32 %s5404_s29, 4  ;;  %s77_s12 = sshll.u32 %s5405_s11, 4  ;;  %s50_s30 = int_to_ptr.vmem [resolvable:$true] %s49_s30  ;;  %s78_s12 = int_to_ptr.vmem [resolvable:$true] %s77_s12 }
  0x37   :  { %s5323_s10 = scalar_lea.hbm %s5961_s3, 16384 }
  0x38   :  { %p5324_p10 = scmp.ne.s32.totalorder %s5961_s3, %s5323_s10  ;;  %p5327_p11 = scmp.lt.u32.totalorder %s5323_s10, %s5961_s3 }
  0x3a   :  { %p5329_p12 = pnand %p5327_p11, %p5324_p10 }
  0x3c   :  { %5332 = shalt.err (!%p5329_p12)
}
  0x3d   :  { %s5333_s0 = scalar_lea.vmem %s50_s30, 16384  ;;  %p5338_p0 = scmp.lt.s32.totalorder %s50_s30, %s50_s30 }
  0x3e   :  { %p5334_p13 = scmp.ne.s32.totalorder %s50_s30, %s5333_s0  ;;  %p5339_p1 = scmp.lt.s32.totalorder %s5333_s0, %s5333_s0 }
  0x40   :  { %p5340_p2 = por %p5339_p1, %p5338_p0 }
  0x42   :  { %p5341_p3 = pnand %p5340_p2, %p5334_p13 }
  0x44   :  { %5344 = shalt.err (!%p5341_p3)
}
  0x45   :  { %55 = dma.hbm_to_vmem [thread:$0]  %s5961_s3, 16384, %s50_s30, [#allocation6], %s5398_s19, %s5398_s19, %s5399_s20  }
  0x46   :  { %s5345_s23 = scalar_lea.hbm %s5965_s7, 4096 }
  0x47   :  { %p5346_p4 = scmp.ne.s32.totalorder %s5965_s7, %s5345_s23  ;;  %p5349_p5 = scmp.lt.u32.totalorder %s5345_s23, %s5965_s7 }
  0x49   :  { %p5351_p6 = pnand %p5349_p5, %p5346_p4 }
  0x4b   :  { %5354 = shalt.err (!%p5351_p6)
}
  0x4c   :  { %s5355_s11 = scalar_lea.vmem %s78_s12, 4096  ;;  %p5360_p8 = scmp.lt.s32.totalorder %s78_s12, %s78_s12 }
  0x4d   :  { %p5356_p7 = scmp.ne.s32.totalorder %s78_s12, %s5355_s11  ;;  %p5361_p9 = scmp.lt.s32.totalorder %s5355_s11, %s5355_s11 }
  0x4f   :  { %p5362_p10 = por %p5361_p9, %p5360_p8 }
  0x51   :  { %p5363_p11 = pnand %p5362_p10, %p5356_p7 }
  0x53   :  { %5366 = shalt.err (!%p5363_p11)
}
  0x54   :  { %83 = dma.hbm_to_vmem [thread:$0]  %s5965_s7, 4096, %s78_s12, [#allocation9], %s5402_s5, %s5402_s5, %s5403_s24  }
  0x55   :  { %5389 = dma.done.wait [#allocation3], 1024  }
  0x56   :  { %5390 = vsyncadd [#allocation3], 4294966272 }
  0x57   :  { %5391 = dma.done.wait [#allocation6], 20480  }
  0x58   :  { %5392 = vsyncadd [#allocation6], 4294946816 }
  0x59   :  { %5393 = dma.done.wait [#allocation9], 20480  }
  0x5a   :  { %5394 = vsyncadd [#allocation9], 4294946816  ;;  %v5406_v0 = vmov 0   ;;  %v4753_v1 = vld [vmem:[#allocation5 + $0x4] ss:$16 sps:$4 sm:$0xff]   ;;  %v4778_v36 = vld [vmem:[#allocation2 + $0x8] sm:$0xff]  }
  0x5b   :  { %412 = vmatprep.mubr.bf16.mxu0 %v5406_v0  ;;  %525 = vmatprep.mubr.bf16.mxu1 %v5406_v0  ;;  %v4755_v2 = vld [vmem:[#allocation5] ss:$16 sps:$4 sm:$0xff]   ;;  %v4756_v3 = vld [vmem:[#allocation5 + $0x24] ss:$16 sps:$4 sm:$0xff]   ;;  %v4781_v11 = vld [vmem:[#allocation5 + $0xc] ss:$16 sps:$4 sm:$0xff]  }
  0x5c   :  { %380 = vmatprep.subr.bf16.mxu0 %v4753_v1  ;;  %v4758_v4 = vld [vmem:[#allocation5 + $0x20] ss:$16 sps:$4 sm:$0xff]   ;;  %v4759_v5 = vld [vmem:[#allocation5 + $0x44] ss:$16 sps:$4 sm:$0xff]   ;;  %v4783_v12 = vld [vmem:[#allocation5 + $0x8] ss:$16 sps:$4 sm:$0xff]   ;;  %493 = vmatprep.subr.bf16.mxu1 %v4781_v11 }
  0x5d   :  { %381 = vmatpush1.bf16.msra.mxu0 %v4755_v2  ;;  %v4761_v6 = vld [vmem:[#allocation5 + $0x40] ss:$16 sps:$4 sm:$0xff]   ;;  %v4762_v7 = vld [vmem:[#allocation5 + $0x64] ss:$16 sps:$4 sm:$0xff]   ;;  %v4785_v14 = vld [vmem:[#allocation5 + $0x2c] ss:$16 sps:$4 sm:$0xff]   ;;  %494 = vmatpush1.bf16.msra.mxu1 %v4783_v12 }
  0x5e   :  { %382 = vmatprep.subr.bf16.mxu0 %v4756_v3  ;;  %v4764_v8 = vld [vmem:[#allocation5 + $0x60] ss:$16 sps:$4 sm:$0xff]   ;;  %v4765_v9 = vld [vmem:[#allocation5 + $0x84] ss:$16 sps:$4 sm:$0xff]   ;;  %v4787_v15 = vld [vmem:[#allocation5 + $0x28] ss:$16 sps:$4 sm:$0xff]   ;;  %495 = vmatprep.subr.bf16.mxu1 %v4785_v14 }
  0x5f   :  { %v4767_v10 = vld [vmem:[#allocation5 + $0x80] ss:$16 sps:$4 sm:$0xff]   ;;  %v4768_v13 = vld [vmem:[#allocation5 + $0xa4] ss:$16 sps:$4 sm:$0xff]   ;;  %v4788_v17 = vld [vmem:[#allocation5 + $0x4c] ss:$16 sps:$4 sm:$0xff]  }
  0x60   :  { %v4770_v16 = vld [vmem:[#allocation5 + $0xa0] ss:$16 sps:$4 sm:$0xff]   ;;  %v4771_v18 = vld [vmem:[#allocation5 + $0xc4] ss:$16 sps:$4 sm:$0xff]   ;;  %v4790_v20 = vld [vmem:[#allocation5 + $0x48] ss:$16 sps:$4 sm:$0xff]  }
  0x61   :  { %383 = vmatpush1.bf16.msra.mxu0 %v4758_v4  ;;  %v4773_v19 = vld [vmem:[#allocation5 + $0xc0] ss:$16 sps:$4 sm:$0xff]   ;;  %496 = vmatpush1.bf16.msra.mxu1 %v4787_v15  ;;  %v4792_v21 = vld [vmem:[#allocation5 + $0x6c] ss:$16 sps:$4 sm:$0xff]   ;;  %v4774_v22 = vld [vmem:[#allocation5 + $0xe4] ss:$16 sps:$4 sm:$0xff]  }
  0x62   :  { %384 = vmatprep.subr.bf16.mxu0 %v4759_v5  ;;  %497 = vmatprep.subr.bf16.mxu1 %v4788_v17  ;;  %v4776_v23 = vld [vmem:[#allocation5 + $0xe0] ss:$16 sps:$4 sm:$0xff]   ;;  %v4794_v24 = vld [vmem:[#allocation5 + $0x68] ss:$16 sps:$4 sm:$0xff]   ;;  %v4795_v25 = vld [vmem:[#allocation5 + $0x8c] ss:$16 sps:$4 sm:$0xff]  }
  0x63   :  { %v4777_v26 = vld [vmem:[#allocation2] sm:$0xff]   ;;  %v4797_v27 = vld [vmem:[#allocation5 + $0x88] ss:$16 sps:$4 sm:$0xff]   ;;  %v4799_v29 = vld [vmem:[#allocation5 + $0xac] ss:$16 sps:$4 sm:$0xff]  }
  0x64   :  { %v4811_v28 = vld [vmem:[#allocation7 + $0x4] ss:$16 sps:$4 sm:$0xff]   ;;  %v4809_v30 = vld [vmem:[#allocation7] ss:$16 sps:$4 sm:$0xff]   ;;  %v4801_v32 = vld [vmem:[#allocation5 + $0xa8] ss:$16 sps:$4 sm:$0xff]  }
  0x65   :  { %385 = vmatpush1.bf16.msra.mxu0 %v4761_v6  ;;  %498 = vmatpush1.bf16.msra.mxu1 %v4790_v20  ;;  %v4817_v31 = vld [vmem:[#allocation7 + $0x24] ss:$16 sps:$4 sm:$0xff]   ;;  %v4802_v33 = vld [vmem:[#allocation5 + $0xcc] ss:$16 sps:$4 sm:$0xff]   ;;  %v4815_v34 = vld [vmem:[#allocation7 + $0x20] ss:$16 sps:$4 sm:$0xff]  }
  0x66   :  { %386 = vmatprep.subr.bf16.mxu0 %v4762_v7  ;;  %499 = vmatprep.subr.bf16.mxu1 %v4792_v21  ;;  %v4823_v35 = vld [vmem:[#allocation7 + $0x44] ss:$16 sps:$4 sm:$0xff]   ;;  %v4804_v37 = vld [vmem:[#allocation5 + $0xc8] ss:$16 sps:$4 sm:$0xff]   ;;  %v4806_v38 = vld [vmem:[#allocation5 + $0xec] ss:$16 sps:$4 sm:$0xff]  }
  0x67   :  { %v4821_v39 = vld [vmem:[#allocation7 + $0x40] ss:$16 sps:$4 sm:$0xff]   ;;  %v4829_v40 = vld [vmem:[#allocation7 + $0x64] ss:$16 sps:$4 sm:$0xff]   ;;  %v4808_v41 = vld [vmem:[#allocation5 + $0xe8] ss:$16 sps:$4 sm:$0xff]  }
  0x68   :  { %v4814_v42 = vld [vmem:[#allocation7 + $0xc] ss:$16 sps:$4 sm:$0xff]   ;;  %v4827_v43 = vld [vmem:[#allocation7 + $0x60] ss:$16 sps:$4 sm:$0xff]   ;;  %v4835_v44 = vld [vmem:[#allocation7 + $0x84] ss:$16 sps:$4 sm:$0xff]  }
  0x69   :  { %387 = vmatpush1.bf16.msra.mxu0 %v4764_v8  ;;  %500 = vmatpush1.bf16.msra.mxu1 %v4794_v24  ;;  %v4779_v45 = vld [vmem:[#allocation2 + $0x10] sm:$0xff]   ;;  %v4812_v46 = vld [vmem:[#allocation7 + $0x8] ss:$16 sps:$4 sm:$0xff]   ;;  %v4820_v47 = vld [vmem:[#allocation7 + $0x2c] ss:$16 sps:$4 sm:$0xff]  }
  0x6a   :  { %388 = vmatprep.subr.bf16.mxu0 %v4765_v9  ;;  %501 = vmatprep.subr.bf16.mxu1 %v4795_v25  ;;  %v4833_v48 = vld [vmem:[#allocation7 + $0x80] ss:$16 sps:$4 sm:$0xff]   ;;  %v4841_v49 = vld [vmem:[#allocation7 + $0xa4] ss:$16 sps:$4 sm:$0xff]   ;;  %v4818_v50 = vld [vmem:[#allocation7 + $0x28] ss:$16 sps:$4 sm:$0xff]  }
  0x6b   :  { %v4826_v51 = vld [vmem:[#allocation7 + $0x4c] ss:$16 sps:$4 sm:$0xff]   ;;  %v4839_v52 = vld [vmem:[#allocation7 + $0xa0] ss:$16 sps:$4 sm:$0xff]   ;;  %v4847_v53 = vld [vmem:[#allocation7 + $0xc4] ss:$16 sps:$4 sm:$0xff]  }
  0x6c   :  { %v4780_v54 = vld [vmem:[#allocation2 + $0x18] sm:$0xff]   ;;  %v4845_v57 = vld [vmem:[#allocation7 + $0xc0] ss:$16 sps:$4 sm:$0xff]   ;;  %v4853_v58 = vld [vmem:[#allocation7 + $0xe4] ss:$16 sps:$4 sm:$0xff]  }
  0x6d   :  { %389 = vmatpush1.bf16.msra.mxu0 %v4767_v10  ;;  %502 = vmatpush1.bf16.msra.mxu1 %v4797_v27  ;;  %v4824_v55 = vld [vmem:[#allocation7 + $0x48] ss:$16 sps:$4 sm:$0xff]   ;;  %v4832_v56 = vld [vmem:[#allocation7 + $0x6c] ss:$16 sps:$4 sm:$0xff]   ;;  %v4851_v61 = vld [vmem:[#allocation7 + $0xe0] ss:$16 sps:$4 sm:$0xff]  }
  0x6e   :  { %390 = vmatprep.subr.bf16.mxu0 %v4768_v13  ;;  %503 = vmatprep.subr.bf16.mxu1 %v4799_v29  ;;  %v4830_v59 = vld [vmem:[#allocation7 + $0x68] ss:$16 sps:$4 sm:$0xff]   ;;  %v4838_v60 = vld [vmem:[#allocation7 + $0x8c] ss:$16 sps:$4 sm:$0xff]   ;;  %v4859_v62 = vld [vmem:[#allocation7 + $0x104] ss:$16 sps:$4 sm:$0xff]  }
  0x6f   :  { %v4784_v63 = vld [vmem:[#allocation2 + $0x20] sm:$0xff]   ;;  %v4836_v1 = vld [vmem:[#allocation7 + $0x88] ss:$16 sps:$4 sm:$0xff]   ;;  %v4844_v2 = vld [vmem:[#allocation7 + $0xac] ss:$16 sps:$4 sm:$0xff]  }
  0x70   :  { %v4857_v3 = vld [vmem:[#allocation7 + $0x100] ss:$16 sps:$4 sm:$0xff]   ;;  %v4865_v4 = vld [vmem:[#allocation7 + $0x124] ss:$16 sps:$4 sm:$0xff]   ;;  %v4842_v5 = vld [vmem:[#allocation7 + $0xa8] ss:$16 sps:$4 sm:$0xff]  }
  0x71   :  { %391 = vmatpush1.bf16.msra.mxu0 %v4770_v16  ;;  %504 = vmatpush1.bf16.msra.mxu1 %v4801_v32  ;;  %v4850_v6 = vld [vmem:[#allocation7 + $0xcc] ss:$16 sps:$4 sm:$0xff]   ;;  %v4863_v7 = vld [vmem:[#allocation7 + $0x120] ss:$16 sps:$4 sm:$0xff]   ;;  %v4871_v8 = vld [vmem:[#allocation7 + $0x144] ss:$16 sps:$4 sm:$0xff]  }
  0x72   :  { %392 = vmatprep.subr.bf16.mxu0 %v4771_v18  ;;  %505 = vmatprep.subr.bf16.mxu1 %v4802_v33  ;;  %v4791_v9 = vld [vmem:[#allocation2 + $0x28] sm:$0xff]   ;;  %v4869_v12 = vld [vmem:[#allocation7 + $0x140] ss:$16 sps:$4 sm:$0xff]   ;;  %v4877_v13 = vld [vmem:[#allocation7 + $0x164] ss:$16 sps:$4 sm:$0xff]  }
  0x73   :  { %v4848_v10 = vld [vmem:[#allocation7 + $0xc8] ss:$16 sps:$4 sm:$0xff]   ;;  %v4856_v11 = vld [vmem:[#allocation7 + $0xec] ss:$16 sps:$4 sm:$0xff]   ;;  %v4875_v16 = vld [vmem:[#allocation7 + $0x160] ss:$16 sps:$4 sm:$0xff]  }
  0x74   :  { %v4854_v14 = vld [vmem:[#allocation7 + $0xe8] ss:$16 sps:$4 sm:$0xff]   ;;  %v4862_v15 = vld [vmem:[#allocation7 + $0x10c] ss:$16 sps:$4 sm:$0xff]   ;;  %v4883_v17 = vld [vmem:[#allocation7 + $0x184] ss:$16 sps:$4 sm:$0xff]  }
  0x75   :  { %393 = vmatpush1.bf16.msra.mxu0 %v4773_v19  ;;  %506 = vmatpush1.bf16.msra.mxu1 %v4804_v37  ;;  %v4798_v18 = vld [vmem:[#allocation2 + $0x30] sm:$0xff]   ;;  %v4860_v19 = vld [vmem:[#allocation7 + $0x108] ss:$16 sps:$4 sm:$0xff]   ;;  %v4868_v20 = vld [vmem:[#allocation7 + $0x12c] ss:$16 sps:$4 sm:$0xff]  }
  0x76   :  { %394 = vmatprep.subr.bf16.mxu0 %v4774_v22  ;;  %507 = vmatprep.subr.bf16.mxu1 %v4806_v38  ;;  %v4881_v21 = vld [vmem:[#allocation7 + $0x180] ss:$16 sps:$4 sm:$0xff]   ;;  %v4889_v22 = vld [vmem:[#allocation7 + $0x1a4] ss:$16 sps:$4 sm:$0xff]   ;;  %v4874_v24 = vld [vmem:[#allocation7 + $0x14c] ss:$16 sps:$4 sm:$0xff]  }
  0x77   :  { %v4887_v25 = vld [vmem:[#allocation7 + $0x1a0] ss:$16 sps:$4 sm:$0xff]   ;;  %v4872_v27 = vld [vmem:[#allocation7 + $0x148] ss:$16 sps:$4 sm:$0xff]   ;;  %v4892_v32 = vld [vmem:[#allocation7 + $0x1ac] ss:$16 sps:$4 sm:$0xff]  }
  0x78   :  { %v4878_v29 = vld [vmem:[#allocation7 + $0x168] ss:$16 sps:$4 sm:$0xff]   ;;  %v4901_v38 = vld [vmem:[#allocation7 + $0x1e4] ss:$16 sps:$4 sm:$0xff]  }
  0x79   :  { %395 = vmatpush1.bf16.msra.mxu0 %v4776_v23  ;;  %508 = vmatpush1.bf16.msra.mxu1 %v4808_v41  ;;  %v4866_v23 = vld [vmem:[#allocation7 + $0x128] ss:$16 sps:$4 sm:$0xff]  }
  0x7a   :  { %1492 = vmatprep.subr.bf16.mxu0 %v4811_v28  ;;  %1718 = vmatprep.subr.bf16.mxu1 %v4814_v42  ;;  %v4880_v28 = vld [vmem:[#allocation7 + $0x16c] ss:$16 sps:$4 sm:$0xff]   ;;  %v4890_v33 = vld [vmem:[#allocation7 + $0x1a8] ss:$16 sps:$4 sm:$0xff]  }
  0x7b   :  { %v4896_v37 = vld [vmem:[#allocation7 + $0x1c8] ss:$16 sps:$4 sm:$0xff]   ;;  %v4910_v42 = vld [vmem:[#allocation7 + $0x20c] ss:$16 sps:$4 sm:$0xff]  }
  0x7c   :  { %413 = vmatmul.mubr.bf16.vlgmr.msra.gmra.mrb[0].mxu0 %v4777_v26  ;;  %526 = vmatmul.mubr.bf16.vlgmr.msra.gmra.mrb[0].mxu1 %v4777_v26  ;;  %v4805_v26 = vld [vmem:[#allocation2 + $0x38] sm:$0xff]  }
  0x7d   :  { %422 = vmatprep.mubr.bf16.mxu0 %v5406_v0  ;;  %1493 = vmatpush1.bf16.msra.mxu0 %v4809_v30  ;;  %v4886_v30 = vld [vmem:[#allocation7 + $0x18c] ss:$16 sps:$4 sm:$0xff]   ;;  %v4902_v41 = vld [vmem:[#allocation7 + $0x1e8] ss:$16 sps:$4 sm:$0xff]  }
  0x7e   :  { %1494 = vmatprep.subr.bf16.mxu0 %v4817_v31  ;;  %535 = vmatprep.mubr.bf16.mxu1 %v5406_v0  ;;  %v4884_v31 = vld [vmem:[#allocation7 + $0x188] ss:$16 sps:$4 sm:$0xff]  }
  0x7f   :  { %1719 = vmatpush1.bf16.msra.mxu1 %v4812_v46  ;;  %v150_v46 = vld [vmem:[%s5960_s2] sm:$0xf] }
  0x80   :  { %1720 = vmatprep.subr.bf16.mxu1 %v4820_v47 }
  0x81   :  { %1495 = vmatpush1.bf16.msra.mxu0 %v4815_v34  ;;  %v4895_v34 = vld [vmem:[#allocation7 + $0x1c4] ss:$16 sps:$4 sm:$0xff]  }
  0x82   :  { %1496 = vmatprep.subr.bf16.mxu0 %v4823_v35  ;;  %v4898_v35 = vld [vmem:[#allocation7 + $0x1cc] ss:$16 sps:$4 sm:$0xff]  }
  0x83   :  { %1721 = vmatpush1.bf16.msra.mxu1 %v4818_v50 }
  0x84   :  { %423 = vmatmul.mubr.bf16.gmra.mrb[4].mxu0 %v4778_v36  ;;  %1722 = vmatprep.subr.bf16.mxu1 %v4826_v51 }
  0x85   :  { %432 = vmatprep.mubr.bf16.mxu0 %v5406_v0  ;;  %1497 = vmatpush1.bf16.msra.mxu0 %v4821_v39  ;;  %v4904_v39 = vld [vmem:[#allocation7 + $0x1ec] ss:$16 sps:$4 sm:$0xff]  }
  0x86   :  { %1498 = vmatprep.subr.bf16.mxu0 %v4829_v40  ;;  %536 = vmatmul.mubr.bf16.gmra.mrb[4].mxu1 %v4778_v36  ;;  %v4893_v36 = vld [vmem:[#allocation7 + $0x1c0] ss:$16 sps:$4 sm:$0xff]  }
  0x87   :  { %545 = vmatprep.mubr.bf16.mxu1 %v5406_v0  ;;  %1723 = vmatpush1.bf16.msra.mxu1 %v4824_v55  ;;  %v4899_v40 = vld [vmem:[#allocation7 + $0x1e0] ss:$16 sps:$4 sm:$0xff]  }
  0x88   :  { %1724 = vmatprep.subr.bf16.mxu1 %v4832_v56 }
  0x89   :  { %1499 = vmatpush1.bf16.msra.mxu0 %v4827_v43  ;;  %v152_v43 = vlaneseq }
  0x8a   :  { %1500 = vmatprep.subr.bf16.mxu0 %v4835_v44 }
  0x8b   :  { %1725 = vmatpush1.bf16.msra.mxu1 %v4830_v59  ;;  %v153_v44 = vshrl.u32 %v152_v43, 7 }
  0x8c   :  { %433 = vmatmul.mubr.bf16.gmra.mrb[8].mxu0 %v4779_v45  ;;  %1726 = vmatprep.subr.bf16.mxu1 %v4838_v60 }
  0x8d   :  { %442 = vmatprep.mubr.bf16.mxu0 %v5406_v0  ;;  %1501 = vmatpush1.bf16.msra.mxu0 %v4833_v48  ;;  %v5554_v47 = vsub.s32 1, %v153_v44 }
  0x8e   :  { %1502 = vmatprep.subr.bf16.mxu0 %v4841_v49  ;;  %546 = vmatmul.mubr.bf16.gmra.mrb[8].mxu1 %v4779_v45  ;;  %v5549_v45 = vsub.s32 0, %v153_v44 }
  0x8f   :  { %555 = vmatprep.mubr.bf16.mxu1 %v5406_v0  ;;  %1727 = vmatpush1.bf16.msra.mxu1 %v4836_v1  ;;  %v5560_v49 = vrot.slane %v150_v46, %v5554_v47 }
  0x90   :  { %1728 = vmatprep.subr.bf16.mxu1 %v4844_v2  ;;  %v5557_v48 = vrot.slane %v150_v46, %v5549_v45  ;;  %v4905_v2 = vld [vmem:[#allocation7 + $0x200] ss:$16 sps:$4 sm:$0xff]  }
  0x91   :  { %1503 = vmatpush1.bf16.msra.mxu0 %v4839_v52 }
  0x92   :  { %1504 = vmatprep.subr.bf16.mxu0 %v4847_v53 }
  0x93   :  { %1729 = vmatpush1.bf16.msra.mxu1 %v4842_v5 }
  0x94   :  { %443 = vmatmul.mubr.bf16.gmra.mrb[12].mxu0 %v4780_v54  ;;  %1730 = vmatprep.subr.bf16.mxu1 %v4850_v6 }
  0x95   :  { %452 = vmatprep.mubr.bf16.mxu0 %v5406_v0  ;;  %1505 = vmatpush1.bf16.msra.mxu0 %v4845_v57 }
  0x96   :  { %1506 = vmatprep.subr.bf16.mxu0 %v4853_v58  ;;  %556 = vmatmul.mubr.bf16.gmra.mrb[12].mxu1 %v4780_v54 }
  0x97   :  { %565 = vmatprep.mubr.bf16.mxu1 %v5406_v0  ;;  %1731 = vmatpush1.bf16.msra.mxu1 %v4848_v10 }
  0x98   :  { %1732 = vmatprep.subr.bf16.mxu1 %v4856_v11 }
  0x99   :  { %1507 = vmatpush1.bf16.msra.mxu0 %v4851_v61 }
  0x9a   :  { %1508 = vmatprep.subr.bf16.mxu0 %v4859_v62 }
  0x9b   :  { %1733 = vmatpush1.bf16.msra.mxu1 %v4854_v14 }
  0x9c   :  { %453 = vmatmul.mubr.bf16.gmra.mrb[16].mxu0 %v4784_v63  ;;  %1734 = vmatprep.subr.bf16.mxu1 %v4862_v15  ;;  %v4911_v15 = vld [vmem:[#allocation7 + $0x220] ss:$16 sps:$4 sm:$0xff]  }
  0x9d   :  { %462 = vmatprep.mubr.bf16.mxu0 %v5406_v0  ;;  %1509 = vmatpush1.bf16.msra.mxu0 %v4857_v3  ;;  %v4908_v3 = vld [vmem:[#allocation7 + $0x208] ss:$16 sps:$4 sm:$0xff]  }
  0x9e   :  { %1510 = vmatprep.subr.bf16.mxu0 %v4865_v4  ;;  %566 = vmatmul.mubr.bf16.gmra.mrb[16].mxu1 %v4784_v63  ;;  %v5566_v4 = vsub.s32 2, %v153_v44 }
  0x9f   :  { %575 = vmatprep.mubr.bf16.mxu1 %v5406_v0  ;;  %1735 = vmatpush1.bf16.msra.mxu1 %v4860_v19 }
  0xa0   :  { %1736 = vmatprep.subr.bf16.mxu1 %v4868_v20  ;;  %v4919_v20 = vld [vmem:[#allocation7 + $0x244] ss:$16 sps:$4 sm:$0xff]  }
  0xa1   :  { %1511 = vmatpush1.bf16.msra.mxu0 %v4863_v7  ;;  %v4913_v7 = vld [vmem:[#allocation7 + $0x224] ss:$16 sps:$4 sm:$0xff]  }
  0xa2   :  { %1512 = vmatprep.subr.bf16.mxu0 %v4871_v8  ;;  %v4916_v8 = vld [vmem:[#allocation7 + $0x22c] ss:$16 sps:$4 sm:$0xff]  }
  0xa3   :  { %1737 = vmatpush1.bf16.msra.mxu1 %v4866_v23 }
  0xa4   :  { %463 = vmatmul.mubr.bf16.gmra.mrb[20].mxu0 %v4791_v9  ;;  %1738 = vmatprep.subr.bf16.mxu1 %v4874_v24 }
  0xa5   :  { %472 = vmatprep.mubr.bf16.mxu0 %v5406_v0  ;;  %1513 = vmatpush1.bf16.msra.mxu0 %v4869_v12 }
  0xa6   :  { %1514 = vmatprep.subr.bf16.mxu0 %v4877_v13  ;;  %576 = vmatmul.mubr.bf16.gmra.mrb[20].mxu1 %v4791_v9  ;;  %v5569_v9 = vsub.s32 3, %v153_v44 }
  0xa7   :  { %585 = vmatprep.mubr.bf16.mxu1 %v5406_v0  ;;  %1739 = vmatpush1.bf16.msra.mxu1 %v4872_v27 }
  0xa8   :  { %1740 = vmatprep.subr.bf16.mxu1 %v4880_v28 }
  0xa9   :  { %1515 = vmatpush1.bf16.msra.mxu0 %v4875_v16  ;;  %v4914_v16 = vld [vmem:[#allocation7 + $0x228] ss:$16 sps:$4 sm:$0xff]  }
  0xaa   :  { %1516 = vmatprep.subr.bf16.mxu0 %v4883_v17  ;;  %v5575_v17 = vrot.slane %v150_v46, %v5566_v4 }
  0xab   :  { %1741 = vmatpush1.bf16.msra.mxu1 %v4878_v29  ;;  %v4917_v29 = vld [vmem:[#allocation7 + $0x240] ss:$16 sps:$4 sm:$0xff]  }
  0xac   :  { %473 = vmatmul.mubr.bf16.gmra.mrb[24].mxu0 %v4798_v18  ;;  %1742 = vmatprep.subr.bf16.mxu1 %v4886_v30  ;;  %v4920_v30 = vld [vmem:[#allocation7 + $0x248] ss:$16 sps:$4 sm:$0xff]  }
  0xad   :  { %482 = vmatprep.mubr.bf16.mxu0 %v5406_v0  ;;  %1517 = vmatpush1.bf16.msra.mxu0 %v4881_v21  ;;  %v4922_v21 = vld [vmem:[#allocation7 + $0x24c] ss:$16 sps:$4 sm:$0xff]  }
  0xae   :  { %1518 = vmatprep.subr.bf16.mxu0 %v4889_v22  ;;  %586 = vmatmul.mubr.bf16.gmra.mrb[24].mxu1 %v4798_v18  ;;  %v5578_v22 = vrot.slane %v150_v46, %v5569_v9  ;;  %v4923_v46 = vld [vmem:[#allocation7 + $0x260] ss:$16 sps:$4 sm:$0xff]  }
  0xaf   :  { %595 = vmatprep.mubr.bf16.mxu1 %v5406_v0  ;;  %1743 = vmatpush1.bf16.msra.mxu1 %v4884_v31  ;;  %v4907_v0 = vld [vmem:[#allocation7 + $0x204] ss:$16 sps:$4 sm:$0xff]  }
  0xb0   :  { %1744 = vmatprep.subr.bf16.mxu1 %v4892_v32 }
  0xb1   :  { %1519 = vmatpush1.bf16.msra.mxu0 %v4887_v25 }
  0xb2   :  { %1520 = vmatprep.subr.bf16.mxu0 %v4895_v34 }
  0xb3   :  { %1745 = vmatpush1.bf16.msra.mxu1 %v4890_v33 }
  0xb4   :  { %483 = vmatmul.mubr.bf16.gmra.mrb[28].mxu0 %v4805_v26  ;;  %1746 = vmatprep.subr.bf16.mxu1 %v4898_v35  ;;  %v4925_v35 = vld [vmem:[#allocation7 + $0x264] ss:$16 sps:$4 sm:$0xff]  }
  0xb5   :  { %1521 = vmatpush1.bf16.msra.mxu0 %v4893_v36  ;;  %v4928_v36 = vld [vmem:[#allocation7 + $0x26c] ss:$16 sps:$4 sm:$0xff]  }
  0xb6   :  { %596 = vmatmul.mubr.bf16.gmra.mrb[28].mxu1 %v4805_v26  ;;  %1522 = vmatprep.subr.bf16.mxu0 %v4901_v38 }
  0xb7   :  { %1747 = vmatpush1.bf16.msra.mxu1 %v4896_v37 }
  0xb8   :  { %1748 = vmatprep.subr.bf16.mxu1 %v4904_v39 }
  0xb9   :  { %1523 = vmatpush1.bf16.msra.mxu0 %v4899_v40 }
  0xba   :  { %1605 = vmatprep.subr.bf16.mxu0 %v4907_v0 }
  0xbb   :  { %1749 = vmatpush1.bf16.msra.mxu1 %v4902_v41 }
  0xbc   :  { %1831 = vmatprep.subr.bf16.mxu1 %v4910_v42 }
 0x14f   :  { %v414_v50 = vpop.f32.mrb[0].mxu0  ;;  %v527_v26 = vpop.f32.mrb[0].mxu1 }
 0x150   :  { %v415_v51 = vadd.f32 %v414_v50, %v5557_v48  ;;  %v416_v52 = vpop.f32.mrb[1].mxu0  ;;  %v528_v31 = vadd.f32 %v527_v26, %v5575_v17  ;;  %v529_v32 = vpop.f32.mrb[1].mxu1  ;;  %v4935_v26 = vld [vmem:[#allocation7 + $0x2a0] ss:$16 sps:$4 sm:$0xff]  }
 0x151   :  { %v417_v53 = vadd.f32 %v416_v52, %v5560_v49  ;;  %v418_v54 = vpop.f32.mrb[2].mxu0  ;;  %v530_v37 = vadd.f32 %v529_v32, %v5578_v22  ;;  %v531_v38 = vpop.f32.mrb[2].mxu1 }
 0x152   :  { %v419_v55 = vadd.f32 %v418_v54, %v5557_v48  ;;  %v420_v56 = vpop.f32.mrb[3].mxu0  ;;  %v606_v58 = vmax.f32 %v415_v51, 0.0  ;;  %v608_v41 = vmax.f32 %v528_v31, 0.0  ;;  %v532_v0 = vadd.f32 %v531_v38, %v5575_v17  ;;  %v533_v42 = vpop.f32.mrb[3].mxu1  ;;  %v4931_v54 = vld [vmem:[#allocation7 + $0x284] ss:$16 sps:$4 sm:$0xff]  }
 0x153   :  { %v421_v57 = vadd.f32 %v420_v56, %v5560_v49  ;;  %v607_v60 = vmax.f32 %v417_v53, 0.0  ;;  %v609_v50 = vmax.f32 %v530_v37, 0.0  ;;  %v534_v51 = vadd.f32 %v533_v42, %v5578_v22  ;;  %v4926_v53 = vld [vmem:[#allocation7 + $0x268] ss:$16 sps:$4 sm:$0xff]   ;;  %v4943_v31 = vld [vmem:[#allocation7 + $0x2c4] ss:$16 sps:$4 sm:$0xff]  }
 0x154   :  { %v610_v59 = vmax.f32 %v419_v55, 0.0  ;;  %v612_v55 = vmax.f32 %v532_v0, 0.0 }
 0x155   :  { %v611_v61 = vmax.f32 %v421_v57, 0.0 }
 0x156   :  { %v670_v62 = vpack.c.bf16 %v610_v59, %v606_v58  ;;  %v4934_v58 = vld [vmem:[#allocation7 + $0x28c] ss:$16 sps:$4 sm:$0xff]   ;;  %v613_v59 = vmax.f32 %v534_v51, 0.0 }
 0x157   :  { %v671_v63 = vpack.c.bf16 %v611_v61, %v607_v60  ;;  %v424_v1 = vpop.f32.mrb[4].mxu0 }
 0x158   :  { %v425_v5 = vadd.f32 %v424_v1, %v5557_v48  ;;  %v426_v6 = vpop.f32.mrb[5].mxu0  ;;  %v5590_v1 = vpack.c.bf16 %v613_v59, %v609_v50 }
 0x159   :  { %v427_v10 = vadd.f32 %v426_v6, %v5560_v49  ;;  %v428_v11 = vpop.f32.mrb[6].mxu0  ;;  %1524 = vmatprep.mubr.bf16.mxu0 %v671_v63  ;;  %1750 = vmatprep.mubr.bf16.mxu1 %v671_v63  ;;  %v4929_v6 = vld [vmem:[#allocation7 + $0x280] ss:$16 sps:$4 sm:$0xff]  }
 0x15a   :  { %v429_v12 = vadd.f32 %v428_v11, %v5557_v48  ;;  %v430_v13 = vpop.f32.mrb[7].mxu0  ;;  %1525 = vmatmul.mubr.bf16.vlgmr.msra.gmra.mrb[32].mxu0 %v670_v62  ;;  %1751 = vmatmul.mubr.bf16.vlgmr.msra.gmra.mrb[32].mxu1 %v670_v62  ;;  %v614_v18 = vmax.f32 %v425_v5, 0.0  ;;  %v5588_v62 = vpack.c.bf16 %v612_v55, %v608_v41  ;;  %v4952_v55 = vld [vmem:[#allocation7 + $0x2ec] ss:$16 sps:$4 sm:$0xff]  }
 0x15b   :  { %v431_v14 = vadd.f32 %v430_v13, %v5560_v49  ;;  %1606 = vmatpush1.bf16.msra.mxu0 %v4905_v2  ;;  %1832 = vmatpush1.bf16.msra.mxu1 %v4908_v3  ;;  %v615_v23 = vmax.f32 %v427_v10, 0.0  ;;  %v537_v2 = vpop.f32.mrb[4].mxu1  ;;  %v4937_v13 = vld [vmem:[#allocation7 + $0x2a4] ss:$16 sps:$4 sm:$0xff]  }
 0x15c   :  { %v618_v19 = vmax.f32 %v429_v12, 0.0  ;;  %1607 = vmatprep.subr.bf16.mxu0 %v4913_v7  ;;  %1833 = vmatprep.subr.bf16.mxu1 %v4916_v8  ;;  %v4932_v7 = vld [vmem:[#allocation7 + $0x288] ss:$16 sps:$4 sm:$0xff]   ;;  %v538_v8 = vadd.f32 %v537_v2, %v5575_v17  ;;  %v539_v10 = vpop.f32.mrb[5].mxu1 }
 0x15d   :  { %v619_v24 = vmax.f32 %v431_v14, 0.0  ;;  %v4940_v14 = vld [vmem:[#allocation7 + $0x2ac] ss:$16 sps:$4 sm:$0xff]  }
 0x15e   :  { %v674_v25 = vpack.c.bf16 %v618_v19, %v614_v18 }
 0x15f   :  { %v675_v27 = vpack.c.bf16 %v619_v24, %v615_v23  ;;  %1608 = vmatpush1.bf16.msra.mxu0 %v4911_v15  ;;  %v434_v28 = vpop.f32.mrb[8].mxu0  ;;  %1834 = vmatpush1.bf16.msra.mxu1 %v4914_v16  ;;  %v540_v15 = vadd.f32 %v539_v10, %v5578_v22  ;;  %v541_v16 = vpop.f32.mrb[6].mxu1  ;;  %v4950_v10 = vld [vmem:[#allocation7 + $0x2e8] ss:$16 sps:$4 sm:$0xff]  }
 0x160   :  { %v435_v33 = vadd.f32 %v434_v28, %v5557_v48  ;;  %v436_v34 = vpop.f32.mrb[9].mxu0  ;;  %1609 = vmatprep.subr.bf16.mxu0 %v4919_v20  ;;  %1835 = vmatprep.subr.bf16.mxu1 %v4922_v21  ;;  %v616_v20 = vmax.f32 %v538_v8, 0.0  ;;  %v542_v21 = vadd.f32 %v541_v16, %v5575_v17  ;;  %v543_v23 = vpop.f32.mrb[7].mxu1 }
 0x161   :  { %v437_v39 = vadd.f32 %v436_v34, %v5560_v49  ;;  %v438_v40 = vpop.f32.mrb[10].mxu0  ;;  %1534 = vmatprep.mubr.bf16.mxu0 %v675_v27  ;;  %1760 = vmatprep.mubr.bf16.mxu1 %v675_v27  ;;  %v617_v27 = vmax.f32 %v540_v15, 0.0  ;;  %v544_v28 = vadd.f32 %v543_v23, %v5578_v22  ;;  %v547_v0 = vpop.f32.mrb[8].mxu1  ;;  %v4958_v15 = vld [vmem:[#allocation7 + $0x30c] ss:$16 sps:$4 sm:$0xff]  }
 0x162   :  { %v439_v43 = vadd.f32 %v438_v40, %v5557_v48  ;;  %v440_v44 = vpop.f32.mrb[11].mxu0  ;;  %1535 = vmatmul.mubr.bf16.gmra.mrb[36].mxu0 %v674_v25  ;;  %1761 = vmatmul.mubr.bf16.gmra.mrb[36].mxu1 %v674_v25  ;;  %v622_v56 = vmax.f32 %v435_v33, 0.0  ;;  %v620_v32 = vmax.f32 %v542_v21, 0.0  ;;  %v548_v50 = vadd.f32 %v547_v0, %v5575_v17  ;;  %v549_v51 = vpop.f32.mrb[9].mxu1 }
 0x163   :  { %v441_v52 = vadd.f32 %v440_v44, %v5560_v49  ;;  %1610 = vmatpush1.bf16.msra.mxu0 %v4917_v29  ;;  %1836 = vmatpush1.bf16.msra.mxu1 %v4920_v30  ;;  %v623_v60 = vmax.f32 %v437_v39, 0.0  ;;  %v4938_v30 = vld [vmem:[#allocation7 + $0x2a8] ss:$16 sps:$4 sm:$0xff]   ;;  %v4941_v44 = vld [vmem:[#allocation7 + $0x2c0] ss:$16 sps:$4 sm:$0xff]  }
 0x164   :  { %v626_v57 = vmax.f32 %v439_v43, 0.0  ;;  %1611 = vmatprep.subr.bf16.mxu0 %v4925_v35  ;;  %1837 = vmatprep.subr.bf16.mxu1 %v4928_v36  ;;  %v4946_v35 = vld [vmem:[#allocation7 + $0x2cc] ss:$16 sps:$4 sm:$0xff]   ;;  %v621_v36 = vmax.f32 %v544_v28, 0.0  ;;  %v5600_v39 = vpack.c.bf16 %v620_v32, %v616_v20  ;;  %v4956_v28 = vld [vmem:[#allocation7 + $0x308] ss:$16 sps:$4 sm:$0xff]  }
 0x165   :  { %v627_v61 = vmax.f32 %v441_v52, 0.0 }
 0x166   :  { %v678_v63 = vpack.c.bf16 %v626_v57, %v622_v56  ;;  %v5602_v41 = vpack.c.bf16 %v621_v36, %v617_v27  ;;  %v550_v56 = vadd.f32 %v549_v51, %v5578_v22  ;;  %v551_v57 = vpop.f32.mrb[10].mxu1  ;;  %v4953_v27 = vld [vmem:[#allocation7 + $0x300] ss:$16 sps:$4 sm:$0xff]  }
 0x167   :  { %v679_v3 = vpack.c.bf16 %v627_v61, %v623_v60  ;;  %1612 = vmatpush1.bf16.msra.mxu0 %v4923_v46  ;;  %v444_v5 = vpop.f32.mrb[12].mxu0  ;;  %1838 = vmatpush1.bf16.msra.mxu1 %v4926_v53  ;;  %v4944_v46 = vld [vmem:[#allocation7 + $0x2c8] ss:$16 sps:$4 sm:$0xff]   ;;  %v624_v60 = vmax.f32 %v548_v50, 0.0  ;;  %v552_v61 = vadd.f32 %v551_v57, %v5575_v17 }
 0x168   :  { %v445_v11 = vadd.f32 %v444_v5, %v5557_v48  ;;  %v446_v12 = vpop.f32.mrb[13].mxu0  ;;  %1613 = vmatprep.subr.bf16.mxu0 %v4931_v54  ;;  %1839 = vmatprep.subr.bf16.mxu1 %v4934_v58  ;;  %v4949_v54 = vld [vmem:[#allocation7 + $0x2e4] ss:$16 sps:$4 sm:$0xff]   ;;  %v4947_v5 = vld [vmem:[#allocation7 + $0x2e0] ss:$16 sps:$4 sm:$0xff]  }
 0x169   :  { %v447_v18 = vadd.f32 %v446_v12, %v5560_v49  ;;  %v448_v19 = vpop.f32.mrb[14].mxu0  ;;  %1544 = vmatprep.mubr.bf16.mxu0 %v679_v3  ;;  %1770 = vmatprep.mubr.bf16.mxu1 %v679_v3  ;;  %v628_v12 = vmax.f32 %v552_v61, 0.0 }
 0x16a   :  { %v449_v24 = vadd.f32 %v448_v19, %v5557_v48  ;;  %v450_v25 = vpop.f32.mrb[15].mxu0  ;;  %1545 = vmatmul.mubr.bf16.gmra.mrb[40].mxu0 %v678_v63  ;;  %1771 = vmatmul.mubr.bf16.gmra.mrb[40].mxu1 %v678_v63  ;;  %v630_v33 = vmax.f32 %v445_v11, 0.0  ;;  %v553_v63 = vpop.f32.mrb[11].mxu1  ;;  %v4955_v11 = vld [vmem:[#allocation7 + $0x304] ss:$16 sps:$4 sm:$0xff]  }
 0x16b   :  { %v451_v29 = vadd.f32 %v450_v25, %v5560_v49  ;;  %1614 = vmatpush1.bf16.msra.mxu0 %v4929_v6  ;;  %1840 = vmatpush1.bf16.msra.mxu1 %v4932_v7  ;;  %v631_v37 = vmax.f32 %v447_v18, 0.0  ;;  %v625_v6 = vmax.f32 %v550_v56, 0.0  ;;  %v554_v7 = vadd.f32 %v553_v63, %v5578_v22 }
 0x16c   :  { %v634_v34 = vmax.f32 %v449_v24, 0.0  ;;  %1615 = vmatprep.subr.bf16.mxu0 %v4937_v13  ;;  %1841 = vmatprep.subr.bf16.mxu1 %v4940_v14  ;;  %v5612_v20 = vpack.c.bf16 %v628_v12, %v624_v60  ;;  %v557_v24 = vpop.f32.mrb[12].mxu1 }
 0x16d   :  { %v635_v38 = vmax.f32 %v451_v29, 0.0  ;;  %v629_v16 = vmax.f32 %v554_v7, 0.0  ;;  %v558_v29 = vadd.f32 %v557_v24, %v5575_v17 }
 0x16e   :  { %v682_v40 = vpack.c.bf16 %v634_v34, %v630_v33  ;;  %v4961_v33 = vld [vmem:[#allocation7 + $0x324] ss:$16 sps:$4 sm:$0xff]   ;;  %v4964_v34 = vld [vmem:[#allocation7 + $0x32c] ss:$16 sps:$4 sm:$0xff]  }
 0x16f   :  { %v683_v42 = vpack.c.bf16 %v635_v38, %v631_v37  ;;  %1616 = vmatpush1.bf16.msra.mxu0 %v4935_v26  ;;  %v454_v43 = vpop.f32.mrb[16].mxu0  ;;  %1842 = vmatpush1.bf16.msra.mxu1 %v4938_v30  ;;  %v5614_v23 = vpack.c.bf16 %v629_v16, %v625_v6  ;;  %v559_v30 = vpop.f32.mrb[13].mxu1  ;;  %v4976_v16 = vld [vmem:[#allocation7 + $0x36c] ss:$16 sps:$4 sm:$0xff]  }
 0x170   :  { %v455_v52 = vadd.f32 %v454_v43, %v5557_v48  ;;  %v456_v53 = vpop.f32.mrb[17].mxu0  ;;  %1617 = vmatprep.subr.bf16.mxu0 %v4943_v31  ;;  %1843 = vmatprep.subr.bf16.mxu1 %v4946_v35  ;;  %v560_v35 = vadd.f32 %v559_v30, %v5578_v22  ;;  %v561_v36 = vpop.f32.mrb[14].mxu1  ;;  %v4971_v30 = vld [vmem:[#allocation7 + $0x360] ss:$16 sps:$4 sm:$0xff]  }
 0x171   :  { %v457_v58 = vadd.f32 %v456_v53, %v5560_v49  ;;  %v458_v59 = vpop.f32.mrb[18].mxu0  ;;  %1554 = vmatprep.mubr.bf16.mxu0 %v683_v42  ;;  %1780 = vmatprep.mubr.bf16.mxu1 %v683_v42  ;;  %v562_v0 = vadd.f32 %v561_v36, %v5575_v17  ;;  %v563_v42 = vpop.f32.mrb[15].mxu1  ;;  %v4962_v53 = vld [vmem:[#allocation7 + $0x328] ss:$16 sps:$4 sm:$0xff]  }
 0x172   :  { %v459_v2 = vadd.f32 %v458_v59, %v5557_v48  ;;  %v460_v3 = vpop.f32.mrb[19].mxu0  ;;  %1555 = vmatmul.mubr.bf16.gmra.mrb[44].mxu0 %v682_v40  ;;  %1781 = vmatmul.mubr.bf16.gmra.mrb[44].mxu1 %v682_v40  ;;  %v638_v13 = vmax.f32 %v455_v52, 0.0  ;;  %v632_v40 = vmax.f32 %v558_v29, 0.0  ;;  %v633_v50 = vmax.f32 %v560_v35, 0.0  ;;  %v4979_v35 = vld [vmem:[#allocation7 + $0x384] ss:$16 sps:$4 sm:$0xff]  }
 0x173   :  { %v461_v8 = vadd.f32 %v460_v3, %v5560_v49  ;;  %1618 = vmatpush1.bf16.msra.mxu0 %v4941_v44  ;;  %1844 = vmatpush1.bf16.msra.mxu1 %v4944_v46  ;;  %v639_v18 = vmax.f32 %v457_v58, 0.0  ;;  %v4959_v46 = vld [vmem:[#allocation7 + $0x320] ss:$16 sps:$4 sm:$0xff]   ;;  %v564_v51 = vadd.f32 %v563_v42, %v5578_v22  ;;  %v4970_v58 = vld [vmem:[#allocation7 + $0x34c] ss:$16 sps:$4 sm:$0xff]  }
 0x174   :  { %v642_v14 = vmax.f32 %v459_v2, 0.0  ;;  %1619 = vmatprep.subr.bf16.mxu0 %v4949_v54  ;;  %1845 = vmatprep.subr.bf16.mxu1 %v4952_v55  ;;  %v4967_v54 = vld [vmem:[#allocation7 + $0x344] ss:$16 sps:$4 sm:$0xff]   ;;  %v636_v55 = vmax.f32 %v562_v0, 0.0 }
 0x175   :  { %v643_v19 = vmax.f32 %v461_v8, 0.0  ;;  %v637_v59 = vmax.f32 %v564_v51, 0.0  ;;  %v4965_v8 = vld [vmem:[#allocation7 + $0x340] ss:$16 sps:$4 sm:$0xff]  }
 0x176   :  { %v686_v21 = vpack.c.bf16 %v642_v14, %v638_v13  ;;  %v5624_v63 = vpack.c.bf16 %v636_v55, %v632_v40  ;;  %v4982_v40 = vld [vmem:[#allocation7 + $0x38c] ss:$16 sps:$4 sm:$0xff]   ;;  %v4980_v55 = vld [vmem:[#allocation7 + $0x388] ss:$16 sps:$4 sm:$0xff]  }
 0x177   :  { %v687_v25 = vpack.c.bf16 %v643_v19, %v639_v18  ;;  %1620 = vmatpush1.bf16.msra.mxu0 %v4947_v5  ;;  %v464_v26 = vpop.f32.mrb[20].mxu0  ;;  %1846 = vmatpush1.bf16.msra.mxu1 %v4950_v10  ;;  %v5626_v3 = vpack.c.bf16 %v637_v59, %v633_v50  ;;  %v567_v5 = vpop.f32.mrb[16].mxu1  ;;  %v4968_v10 = vld [vmem:[#allocation7 + $0x348] ss:$16 sps:$4 sm:$0xff]  }
 0x178   :  { %v465_v31 = vadd.f32 %v464_v26, %v5557_v48  ;;  %v466_v32 = vpop.f32.mrb[21].mxu0  ;;  %1621 = vmatprep.subr.bf16.mxu0 %v4955_v11  ;;  %1847 = vmatprep.subr.bf16.mxu1 %v4958_v15  ;;  %v568_v11 = vadd.f32 %v567_v5, %v5575_v17  ;;  %v569_v12 = vpop.f32.mrb[17].mxu1  ;;  %v4973_v15 = vld [vmem:[#allocation7 + $0x364] ss:$16 sps:$4 sm:$0xff]  }
 0x179   :  { %v467_v37 = vadd.f32 %v466_v32, %v5560_v49  ;;  %v468_v38 = vpop.f32.mrb[22].mxu0  ;;  %1564 = vmatprep.mubr.bf16.mxu0 %v687_v25  ;;  %1790 = vmatprep.mubr.bf16.mxu1 %v687_v25  ;;  %v570_v18 = vadd.f32 %v569_v12, %v5578_v22  ;;  %v571_v19 = vpop.f32.mrb[18].mxu1 }
 0x17a   :  { %v469_v43 = vadd.f32 %v468_v38, %v5557_v48  ;;  %v470_v44 = vpop.f32.mrb[23].mxu0  ;;  %1565 = vmatmul.mubr.bf16.gmra.mrb[48].mxu0 %v686_v21  ;;  %1791 = vmatmul.mubr.bf16.gmra.mrb[48].mxu1 %v686_v21  ;;  %v646_v56 = vmax.f32 %v465_v31, 0.0  ;;  %v640_v25 = vmax.f32 %v568_v11, 0.0  ;;  %v572_v26 = vadd.f32 %v571_v19, %v5575_v17  ;;  %v4986_v19 = vld [vmem:[#allocation7 + $0x3a8] ss:$16 sps:$4 sm:$0xff]  }
 0x17b   :  { %v471_v52 = vadd.f32 %v470_v44, %v5560_v49  ;;  %1622 = vmatpush1.bf16.msra.mxu0 %v4953_v27  ;;  %1848 = vmatpush1.bf16.msra.mxu1 %v4956_v28  ;;  %v647_v60 = vmax.f32 %v467_v37, 0.0  ;;  %v573_v27 = vpop.f32.mrb[19].mxu1  ;;  %v641_v31 = vmax.f32 %v570_v18, 0.0 }
 0x17c   :  { %v650_v57 = vmax.f32 %v469_v43, 0.0  ;;  %1623 = vmatprep.subr.bf16.mxu0 %v4961_v33  ;;  %1849 = vmatprep.subr.bf16.mxu1 %v4964_v34  ;;  %v574_v32 = vadd.f32 %v573_v27, %v5578_v22  ;;  %v4974_v34 = vld [vmem:[#allocation7 + $0x368] ss:$16 sps:$4 sm:$0xff]   ;;  %v644_v36 = vmax.f32 %v572_v26, 0.0  ;;  %v577_v51 = vpop.f32.mrb[20].mxu1 }
 0x17d   :  { %v651_v61 = vmax.f32 %v471_v52, 0.0  ;;  %v4994_v27 = vld [vmem:[#allocation7 + $0x3cc] ss:$16 sps:$4 sm:$0xff]  }
 0x17e   :  { %v690_v2 = vpack.c.bf16 %v650_v57, %v646_v56  ;;  %v645_v0 = vmax.f32 %v574_v32, 0.0  ;;  %v5636_v44 = vpack.c.bf16 %v644_v36, %v640_v25  ;;  %v578_v56 = vadd.f32 %v577_v51, %v5575_v17  ;;  %v579_v57 = vpop.f32.mrb[21].mxu1 }
 0x17f   :  { %v691_v6 = vpack.c.bf16 %v651_v61, %v647_v60  ;;  %1624 = vmatpush1.bf16.msra.mxu0 %v4959_v46  ;;  %v474_v7 = vpop.f32.mrb[24].mxu0  ;;  %1850 = vmatpush1.bf16.msra.mxu1 %v4962_v53  ;;  %v4985_v60 = vld [vmem:[#allocation7 + $0x3a4] ss:$16 sps:$4 sm:$0xff]   ;;  %v4988_v61 = vld [vmem:[#allocation7 + $0x3ac] ss:$16 sps:$4 sm:$0xff]   ;;  %v581_v5 = vpop.f32.mrb[22].mxu1 }
 0x180   :  { %v475_v13 = vadd.f32 %v474_v7, %v5557_v48  ;;  %v476_v14 = vpop.f32.mrb[25].mxu0  ;;  %1625 = vmatprep.subr.bf16.mxu0 %v4967_v54  ;;  %1851 = vmatprep.subr.bf16.mxu1 %v4970_v58  ;;  %v5638_v50 = vpack.c.bf16 %v645_v0, %v641_v31  ;;  %v4977_v54 = vld [vmem:[#allocation7 + $0x380] ss:$16 sps:$4 sm:$0xff]   ;;  %v583_v11 = vpop.f32.mrb[23].mxu1 }
 0x181   :  { %v477_v21 = vadd.f32 %v476_v14, %v5560_v49  ;;  %v478_v24 = vpop.f32.mrb[26].mxu0  ;;  %1574 = vmatprep.mubr.bf16.mxu0 %v691_v6  ;;  %1800 = vmatprep.mubr.bf16.mxu1 %v691_v6  ;;  %v4983_v14 = vld [vmem:[#allocation7 + $0x3a0] ss:$16 sps:$4 sm:$0xff]  }
 0x182   :  { %v479_v28 = vadd.f32 %v478_v24, %v5557_v48  ;;  %v480_v29 = vpop.f32.mrb[27].mxu0  ;;  %1575 = vmatmul.mubr.bf16.gmra.mrb[52].mxu0 %v690_v2  ;;  %1801 = vmatmul.mubr.bf16.gmra.mrb[52].mxu1 %v690_v2  ;;  %v654_v37 = vmax.f32 %v475_v13, 0.0  ;;  %v580_v2 = vadd.f32 %v579_v57, %v5578_v22 }
 0x183   :  { %v481_v33 = vadd.f32 %v480_v29, %v5560_v49  ;;  %1626 = vmatpush1.bf16.msra.mxu0 %v4965_v8  ;;  %1852 = vmatpush1.bf16.msra.mxu1 %v4968_v10  ;;  %v655_v42 = vmax.f32 %v477_v21, 0.0  ;;  %v648_v8 = vmax.f32 %v578_v56, 0.0  ;;  %v582_v10 = vadd.f32 %v581_v5, %v5575_v17  ;;  %v4991_v21 = vld [vmem:[#allocation7 + $0x3c4] ss:$16 sps:$4 sm:$0xff]  }
 0x184   :  { %v658_v38 = vmax.f32 %v479_v28, 0.0  ;;  %1627 = vmatprep.subr.bf16.mxu0 %v4973_v15  ;;  %1853 = vmatprep.subr.bf16.mxu1 %v4976_v16  ;;  %v649_v15 = vmax.f32 %v580_v2, 0.0  ;;  %v584_v16 = vadd.f32 %v583_v11, %v5578_v22  ;;  %v5004_v11 = vld [vmem:[#allocation8 + $0x8] ss:$16 sps:$4 sm:$0xff]  }
 0x185   :  { %v659_v43 = vmax.f32 %v481_v33, 0.0  ;;  %v652_v24 = vmax.f32 %v582_v10, 0.0  ;;  %v587_v33 = vpop.f32.mrb[24].mxu1  ;;  %v5001_v10 = vld [vmem:[#allocation8] ss:$16 sps:$4 sm:$0xff]  }
 0x186   :  { %v694_v46 = vpack.c.bf16 %v658_v38, %v654_v37  ;;  %v588_v36 = vadd.f32 %v587_v33, %v5575_v17  ;;  %v589_v37 = vpop.f32.mrb[25].mxu1  ;;  %v4997_v38 = vld [vmem:[#allocation7 + $0x3e4] ss:$16 sps:$4 sm:$0xff]  }
 0x187   :  { %v695_v52 = vpack.c.bf16 %v659_v43, %v655_v42  ;;  %1628 = vmatpush1.bf16.msra.mxu0 %v4971_v30  ;;  %v484_v53 = vpop.f32.mrb[28].mxu0  ;;  %1854 = vmatpush1.bf16.msra.mxu1 %v4974_v34  ;;  %v5648_v30 = vpack.c.bf16 %v652_v24, %v648_v8  ;;  %v4989_v34 = vld [vmem:[#allocation7 + $0x3c0] ss:$16 sps:$4 sm:$0xff]   ;;  %v591_v0 = vpop.f32.mrb[26].mxu1  ;;  %v5000_v42 = vld [vmem:[#allocation7 + $0x3ec] ss:$16 sps:$4 sm:$0xff]  }
 0x188   :  { %v485_v58 = vadd.f32 %v484_v53, %v5557_v48  ;;  %v486_v59 = vpop.f32.mrb[29].mxu0  ;;  %1629 = vmatprep.subr.bf16.mxu0 %v4979_v35  ;;  %1855 = vmatprep.subr.bf16.mxu1 %v4982_v40  ;;  %v4992_v35 = vld [vmem:[#allocation7 + $0x3c8] ss:$16 sps:$4 sm:$0xff]   ;;  %v590_v40 = vadd.f32 %v589_v37, %v5578_v22  ;;  %v656_v43 = vmax.f32 %v588_v36, 0.0  ;;  %v593_v51 = vpop.f32.mrb[27].mxu1 }
 0x189   :  { %v487_v6 = vadd.f32 %v486_v59, %v5560_v49  ;;  %v488_v7 = vpop.f32.mrb[30].mxu0  ;;  %1584 = vmatprep.mubr.bf16.mxu0 %v695_v52  ;;  %1810 = vmatprep.mubr.bf16.mxu1 %v695_v52  ;;  %v594_v53 = vadd.f32 %v593_v51, %v5578_v22  ;;  %v5006_v59 = vld [vmem:[#allocation8 + $0xc] ss:$16 sps:$4 sm:$0xff]   ;;  %v597_v2 = vpop.f32.mrb[28].mxu1  ;;  %v5007_v24 = vld [vmem:[#allocation8 + $0x20] ss:$16 sps:$4 sm:$0xff]  }
 0x18a   :  { %v489_v12 = vadd.f32 %v488_v7, %v5557_v48  ;;  %v490_v13 = vpop.f32.mrb[31].mxu0  ;;  %1585 = vmatmul.mubr.bf16.gmra.mrb[56].mxu0 %v694_v46  ;;  %1811 = vmatmul.mubr.bf16.gmra.mrb[56].mxu1 %v694_v46  ;;  %v662_v25 = vmax.f32 %v485_v58, 0.0  ;;  %v653_v48 = vmax.f32 %v584_v16, 0.0  ;;  %v592_v46 = vadd.f32 %v591_v0, %v5575_v17  ;;  %v5003_v58 = vld [vmem:[#allocation8 + $0x4] ss:$16 sps:$4 sm:$0xff]  }
 0x18b   :  { %v491_v18 = vadd.f32 %v490_v13, %v5560_v49  ;;  %1630 = vmatpush1.bf16.msra.mxu0 %v4977_v54  ;;  %1856 = vmatpush1.bf16.msra.mxu1 %v4980_v55  ;;  %v663_v28 = vmax.f32 %v487_v6, 0.0  ;;  %v657_v52 = vmax.f32 %v590_v40, 0.0  ;;  %v4995_v54 = vld [vmem:[#allocation7 + $0x3e0] ss:$16 sps:$4 sm:$0xff]   ;;  %v4998_v55 = vld [vmem:[#allocation7 + $0x3e8] ss:$16 sps:$4 sm:$0xff]   ;;  %v598_v5 = vadd.f32 %v597_v2, %v5575_v17 }
 0x18c   :  { %v666_v26 = vmax.f32 %v489_v12, 0.0  ;;  %1631 = vmatprep.subr.bf16.mxu0 %v4985_v60  ;;  %1857 = vmatprep.subr.bf16.mxu1 %v4988_v61  ;;  %v5650_v32 = vpack.c.bf16 %v653_v48, %v649_v15  ;;  %v660_v56 = vmax.f32 %v592_v46, 0.0  ;;  %v661_v57 = vmax.f32 %v594_v53, 0.0  ;;  %v599_v6 = vpop.f32.mrb[29].mxu1  ;;  %v5012_v15 = vld [vmem:[#allocation8 + $0x2c] ss:$16 sps:$4 sm:$0xff]  }
 0x18d   :  { %v667_v29 = vmax.f32 %v491_v18, 0.0  ;;  %v600_v7 = vadd.f32 %v599_v6, %v5578_v22  ;;  %v601_v8 = vpop.f32.mrb[30].mxu1  ;;  %v664_v12 = vmax.f32 %v598_v5, 0.0  ;;  %v5016_v48 = vld [vmem:[#allocation8 + $0x48] ss:$16 sps:$4 sm:$0xff]  }
 0x18e   :  { %v698_v31 = vpack.c.bf16 %v666_v26, %v662_v25  ;;  %v5658_v60 = vpack.c.bf16 %v660_v56, %v656_v43  ;;  %v5660_v61 = vpack.c.bf16 %v661_v57, %v657_v52  ;;  %v603_v13 = vpop.f32.mrb[31].mxu1  ;;  %v5015_v26 = vld [vmem:[#allocation8 + $0x44] ss:$16 sps:$4 sm:$0xff]   ;;  %v5034_v37 = vld [vmem:[#allocation8 + $0xa8] ss:$16 sps:$4 sm:$0xff]  }
 0x18f   :  { %v699_v49 = vpack.c.bf16 %v667_v29, %v663_v28  ;;  %1632 = vmatpush1.bf16.msra.mxu0 %v4983_v14  ;;  %1858 = vmatpush1.bf16.msra.mxu1 %v4986_v19  ;;  %v5009_v14 = vld [vmem:[#allocation8 + $0x24] ss:$16 sps:$4 sm:$0xff]   ;;  %v665_v16 = vmax.f32 %v600_v7, 0.0  ;;  %v604_v18 = vadd.f32 %v603_v13, %v5578_v22  ;;  %v5013_v22 = vld [vmem:[#allocation8 + $0x40] ss:$16 sps:$4 sm:$0xff]  }
 0x190   :  { %1633 = vmatprep.subr.bf16.mxu0 %v4991_v21  ;;  %1859 = vmatprep.subr.bf16.mxu1 %v4994_v27  ;;  %v5018_v27 = vld [vmem:[#allocation8 + $0x4c] ss:$16 sps:$4 sm:$0xff]   ;;  %v5019_v29 = vld [vmem:[#allocation8 + $0x60] ss:$16 sps:$4 sm:$0xff]   ;;  %v5027_v33 = vld [vmem:[#allocation8 + $0x84] ss:$16 sps:$4 sm:$0xff]  }
 0x191   :  { %1594 = vmatprep.mubr.bf16.mxu0 %v699_v49  ;;  %1820 = vmatprep.mubr.bf16.mxu1 %v699_v49  ;;  %v669_v21 = vmax.f32 %v604_v18, 0.0  ;;  %v5024_v28 = vld [vmem:[#allocation8 + $0x6c] ss:$16 sps:$4 sm:$0xff]   ;;  %v5033_v36 = vld [vmem:[#allocation8 + $0xa4] ss:$16 sps:$4 sm:$0xff]  }
 0x192   :  { %1595 = vmatmul.mubr.bf16.gmra.mrb[60].mxu0 %v698_v31  ;;  %1821 = vmatmul.mubr.bf16.gmra.mrb[60].mxu1 %v698_v31  ;;  %v5022_v31 = vld [vmem:[#allocation8 + $0x68] ss:$16 sps:$4 sm:$0xff]   ;;  %v5030_v49 = vld [vmem:[#allocation8 + $0x8c] ss:$16 sps:$4 sm:$0xff]   ;;  %v5037_v0 = vld [vmem:[#allocation8 + $0xc0] ss:$16 sps:$4 sm:$0xff]  }
 0x193   :  { %1634 = vmatpush1.bf16.msra.mxu0 %v4989_v34  ;;  %1860 = vmatpush1.bf16.msra.mxu1 %v4992_v35  ;;  %v5025_v34 = vld [vmem:[#allocation8 + $0x80] ss:$16 sps:$4 sm:$0xff]   ;;  %v5028_v35 = vld [vmem:[#allocation8 + $0x88] ss:$16 sps:$4 sm:$0xff]   ;;  %v5042_v40 = vld [vmem:[#allocation8 + $0xcc] ss:$16 sps:$4 sm:$0xff]  }
 0x194   :  { %1635 = vmatprep.subr.bf16.mxu0 %v4997_v38  ;;  %1637 = vmatprep.mubr.bf16.mxu0 %v5590_v1  ;;  %v5039_v38 = vld [vmem:[#allocation8 + $0xc4] ss:$16 sps:$4 sm:$0xff]   ;;  %v5046_v46 = vld [vmem:[#allocation8 + $0xe8] ss:$16 sps:$4 sm:$0xff]   ;;  %v5054_v52 = vld [vmem:[#allocation8 + $0x10c] ss:$16 sps:$4 sm:$0xff]  }
 0x195   :  { %1861 = vmatprep.subr.bf16.mxu1 %v5000_v42  ;;  %1863 = vmatprep.mubr.bf16.mxu1 %v5590_v1  ;;  %v602_v1 = vadd.f32 %v601_v8, %v5575_v17  ;;  %v5010_v17 = vld [vmem:[#allocation8 + $0x28] ss:$16 sps:$4 sm:$0xff]   ;;  %v5045_v43 = vld [vmem:[#allocation8 + $0xe4] ss:$16 sps:$4 sm:$0xff]   ;;  %v5049_v53 = vld [vmem:[#allocation8 + $0x100] ss:$16 sps:$4 sm:$0xff]  }
 0x196   :  { %v5040_v42 = vld [vmem:[#allocation8 + $0xc8] ss:$16 sps:$4 sm:$0xff]   ;;  %v5051_v51 = vld [vmem:[#allocation8 + $0x104] ss:$16 sps:$4 sm:$0xff]   ;;  %v5078_v8 = vld [vmem:[#allocation8 + $0x18c] ss:$16 sps:$4 sm:$0xff]  }
 0x197   :  { %1636 = vmatpush1.bf16.msra.mxu0 %v4995_v54  ;;  %1862 = vmatpush1.bf16.msra.mxu1 %v4998_v55  ;;  %v668_v19 = vmax.f32 %v602_v1, 0.0  ;;  %v5052_v54 = vld [vmem:[#allocation8 + $0x108] ss:$16 sps:$4 sm:$0xff]   ;;  %v5057_v55 = vld [vmem:[#allocation8 + $0x124] ss:$16 sps:$4 sm:$0xff]  }
 0x198   :  { %2830 = vmatprep.subr.bf16.mxu0 %v5003_v58  ;;  %3056 = vmatprep.subr.bf16.mxu1 %v5006_v59  ;;  %v5058_v56 = vld [vmem:[#allocation8 + $0x128] ss:$16 sps:$4 sm:$0xff]   ;;  %v5063_v57 = vld [vmem:[#allocation8 + $0x144] ss:$16 sps:$4 sm:$0xff]   ;;  %v5066_v58 = vld [vmem:[#allocation8 + $0x14c] ss:$16 sps:$4 sm:$0xff]  }
 0x199   :  { %v5670_v25 = vpack.c.bf16 %v668_v19, %v664_v12  ;;  %v5061_v59 = vld [vmem:[#allocation8 + $0x140] ss:$16 sps:$4 sm:$0xff]   ;;  %v5064_v2 = vld [vmem:[#allocation8 + $0x148] ss:$16 sps:$4 sm:$0xff]   ;;  %v5069_v5 = vld [vmem:[#allocation8 + $0x164] ss:$16 sps:$4 sm:$0xff]  }
 0x19a   :  { %1638 = vmatmul.mubr.bf16.vlgmr.msra.gmra.mrb[32].mxu0 %v5588_v62  ;;  %1864 = vmatmul.mubr.bf16.vlgmr.msra.gmra.mrb[32].mxu1 %v5588_v62  ;;  %v5672_v62 = vpack.c.bf16 %v669_v21, %v665_v16  ;;  %v5070_v6 = vld [vmem:[#allocation8 + $0x168] ss:$16 sps:$4 sm:$0xff]   ;;  %v5075_v7 = vld [vmem:[#allocation8 + $0x184] ss:$16 sps:$4 sm:$0xff]   ;;  %v5096_v18 = vld [vmem:[#allocation8 + $0x1ec] ss:$16 sps:$4 sm:$0xff]  }
 0x19b   :  { %1647 = vmatprep.mubr.bf16.mxu0 %v5602_v41  ;;  %1873 = vmatprep.mubr.bf16.mxu1 %v5602_v41  ;;  %v5021_v41 = vld [vmem:[#allocation8 + $0x64] ss:$16 sps:$4 sm:$0xff]   ;;  %v5082_v1 = vld [vmem:[#allocation8 + $0x1a8] ss:$16 sps:$4 sm:$0xff]   ;;  %v5091_v19 = vld [vmem:[#allocation8 + $0x1e0] ss:$16 sps:$4 sm:$0xff]  }
 0x19c   :  { %2831 = vmatpush1.bf16.msra.mxu0 %v5001_v10  ;;  %3057 = vmatpush1.bf16.msra.mxu1 %v5004_v11  ;;  %v5073_v10 = vld [vmem:[#allocation8 + $0x180] ss:$16 sps:$4 sm:$0xff]   ;;  %v5076_v11 = vld [vmem:[#allocation8 + $0x188] ss:$16 sps:$4 sm:$0xff]   ;;  %v5081_v12 = vld [vmem:[#allocation8 + $0x1a4] ss:$16 sps:$4 sm:$0xff]  }
 0x19d   :  { %2832 = vmatprep.subr.bf16.mxu0 %v5009_v14  ;;  %3058 = vmatprep.subr.bf16.mxu1 %v5012_v15  ;;  %v5087_v13 = vld [vmem:[#allocation8 + $0x1c4] ss:$16 sps:$4 sm:$0xff]   ;;  %v5090_v14 = vld [vmem:[#allocation8 + $0x1cc] ss:$16 sps:$4 sm:$0xff]   ;;  %v5085_v15 = vld [vmem:[#allocation8 + $0x1c0] ss:$16 sps:$4 sm:$0xff]  }
 0x19e   :  { %v5093_v16 = vld [vmem:[#allocation8 + $0x1e4] ss:$16 sps:$4 sm:$0xff]   ;;  %v5094_v21 = vld [vmem:[#allocation8 + $0x1e8] ss:$16 sps:$4 sm:$0xff]  }
 0x1a0   :  { %2833 = vmatpush1.bf16.msra.mxu0 %v5007_v24  ;;  %3059 = vmatpush1.bf16.msra.mxu1 %v5010_v17  ;;  %v5099_v24 = vld [vmem:[#allocation8 + $0x204] ss:$16 sps:$4 sm:$0xff]   ;;  %v5102_v17 = vld [vmem:[#allocation8 + $0x20c] ss:$16 sps:$4 sm:$0xff]  }
 0x1a1   :  { %2834 = vmatprep.subr.bf16.mxu0 %v5015_v26  ;;  %3060 = vmatprep.subr.bf16.mxu1 %v5018_v27 }
 0x1a2   :  { %1648 = vmatmul.mubr.bf16.gmra.mrb[36].mxu0 %v5600_v39  ;;  %1874 = vmatmul.mubr.bf16.gmra.mrb[36].mxu1 %v5600_v39  ;;  %v5036_v39 = vld [vmem:[#allocation8 + $0xac] ss:$16 sps:$4 sm:$0xff]  }
 0x1a3   :  { %1657 = vmatprep.mubr.bf16.mxu0 %v5614_v23  ;;  %1883 = vmatprep.mubr.bf16.mxu1 %v5614_v23  ;;  %v5031_v23 = vld [vmem:[#allocation8 + $0xa0] ss:$16 sps:$4 sm:$0xff]  }
 0x1a4   :  { %2835 = vmatpush1.bf16.msra.mxu0 %v5013_v22  ;;  %3061 = vmatpush1.bf16.msra.mxu1 %v5016_v48 }
 0x1a5   :  { %2836 = vmatprep.subr.bf16.mxu0 %v5021_v41  ;;  %3062 = vmatprep.subr.bf16.mxu1 %v5024_v28 }
 0x1a8   :  { %2837 = vmatpush1.bf16.msra.mxu0 %v5019_v29  ;;  %3063 = vmatpush1.bf16.msra.mxu1 %v5022_v31 }
 0x1a9   :  { %2838 = vmatprep.subr.bf16.mxu0 %v5027_v33  ;;  %3064 = vmatprep.subr.bf16.mxu1 %v5030_v49 }
 0x1aa   :  { %1658 = vmatmul.mubr.bf16.gmra.mrb[40].mxu0 %v5612_v20  ;;  %1884 = vmatmul.mubr.bf16.gmra.mrb[40].mxu1 %v5612_v20  ;;  %v5048_v20 = vld [vmem:[#allocation8 + $0xec] ss:$16 sps:$4 sm:$0xff]  }
 0x1ab   :  { %1667 = vmatprep.mubr.bf16.mxu0 %v5626_v3  ;;  %1893 = vmatprep.mubr.bf16.mxu1 %v5626_v3  ;;  %v5043_v3 = vld [vmem:[#allocation8 + $0xe0] ss:$16 sps:$4 sm:$0xff]  }
 0x1ac   :  { %2839 = vmatpush1.bf16.msra.mxu0 %v5025_v34  ;;  %3065 = vmatpush1.bf16.msra.mxu1 %v5028_v35 }
 0x1ad   :  { %2840 = vmatprep.subr.bf16.mxu0 %v5033_v36  ;;  %3066 = vmatprep.subr.bf16.mxu1 %v5036_v39 }
 0x1b0   :  { %2841 = vmatpush1.bf16.msra.mxu0 %v5031_v23  ;;  %3067 = vmatpush1.bf16.msra.mxu1 %v5034_v37 }
 0x1b1   :  { %2842 = vmatprep.subr.bf16.mxu0 %v5039_v38  ;;  %3068 = vmatprep.subr.bf16.mxu1 %v5042_v40 }
 0x1b2   :  { %1668 = vmatmul.mubr.bf16.gmra.mrb[44].mxu0 %v5624_v63  ;;  %1894 = vmatmul.mubr.bf16.gmra.mrb[44].mxu1 %v5624_v63  ;;  %v5060_v63 = vld [vmem:[#allocation8 + $0x12c] ss:$16 sps:$4 sm:$0xff]  }
 0x1b3   :  { %1677 = vmatprep.mubr.bf16.mxu0 %v5638_v50  ;;  %1903 = vmatprep.mubr.bf16.mxu1 %v5638_v50  ;;  %v5055_v50 = vld [vmem:[#allocation8 + $0x120] ss:$16 sps:$4 sm:$0xff]  }
 0x1b4   :  { %2843 = vmatpush1.bf16.msra.mxu0 %v5037_v0  ;;  %3069 = vmatpush1.bf16.msra.mxu1 %v5040_v42 }
 0x1b5   :  { %2844 = vmatprep.subr.bf16.mxu0 %v5045_v43  ;;  %3070 = vmatprep.subr.bf16.mxu1 %v5048_v20 }
 0x1b8   :  { %2845 = vmatpush1.bf16.msra.mxu0 %v5043_v3  ;;  %3071 = vmatpush1.bf16.msra.mxu1 %v5046_v46 }
 0x1b9   :  { %2846 = vmatprep.subr.bf16.mxu0 %v5051_v51  ;;  %3072 = vmatprep.subr.bf16.mxu1 %v5054_v52 }
 0x1ba   :  { %1678 = vmatmul.mubr.bf16.gmra.mrb[48].mxu0 %v5636_v44  ;;  %1904 = vmatmul.mubr.bf16.gmra.mrb[48].mxu1 %v5636_v44  ;;  %v5072_v44 = vld [vmem:[#allocation8 + $0x16c] ss:$16 sps:$4 sm:$0xff]  }
 0x1bb   :  { %1687 = vmatprep.mubr.bf16.mxu0 %v5650_v32  ;;  %1913 = vmatprep.mubr.bf16.mxu1 %v5650_v32  ;;  %v5067_v32 = vld [vmem:[#allocation8 + $0x160] ss:$16 sps:$4 sm:$0xff]  }
 0x1bc   :  { %2847 = vmatpush1.bf16.msra.mxu0 %v5049_v53  ;;  %3073 = vmatpush1.bf16.msra.mxu1 %v5052_v54 }
 0x1bd   :  { %2848 = vmatprep.subr.bf16.mxu0 %v5057_v55  ;;  %3074 = vmatprep.subr.bf16.mxu1 %v5060_v63 }
 0x1c0   :  { %2849 = vmatpush1.bf16.msra.mxu0 %v5055_v50  ;;  %3075 = vmatpush1.bf16.msra.mxu1 %v5058_v56 }
 0x1c1   :  { %2850 = vmatprep.subr.bf16.mxu0 %v5063_v57  ;;  %3076 = vmatprep.subr.bf16.mxu1 %v5066_v58  ;;  %v5097_v58 = vld [vmem:[#allocation8 + $0x200] ss:$16 sps:$4 sm:$0xff]  }
 0x1c2   :  { %1688 = vmatmul.mubr.bf16.gmra.mrb[52].mxu0 %v5648_v30  ;;  %1914 = vmatmul.mubr.bf16.gmra.mrb[52].mxu1 %v5648_v30  ;;  %v5084_v30 = vld [vmem:[#allocation8 + $0x1ac] ss:$16 sps:$4 sm:$0xff]  }
 0x1c3   :  { %1697 = vmatprep.mubr.bf16.mxu0 %v5660_v61  ;;  %1923 = vmatprep.mubr.bf16.mxu1 %v5660_v61  ;;  %v5079_v61 = vld [vmem:[#allocation8 + $0x1a0] ss:$16 sps:$4 sm:$0xff]  }
 0x1c4   :  { %2851 = vmatpush1.bf16.msra.mxu0 %v5061_v59  ;;  %3077 = vmatpush1.bf16.msra.mxu1 %v5064_v2  ;;  %v5100_v59 = vld [vmem:[#allocation8 + $0x208] ss:$16 sps:$4 sm:$0xff]  }
 0x1c5   :  { %2852 = vmatprep.subr.bf16.mxu0 %v5069_v5  ;;  %3078 = vmatprep.subr.bf16.mxu1 %v5072_v44 }
 0x1c8   :  { %2853 = vmatpush1.bf16.msra.mxu0 %v5067_v32  ;;  %3079 = vmatpush1.bf16.msra.mxu1 %v5070_v6  ;;  %v5105_v6 = vld [vmem:[#allocation8 + $0x224] ss:$16 sps:$4 sm:$0xff]  }
 0x1c9   :  { %2854 = vmatprep.subr.bf16.mxu0 %v5075_v7  ;;  %3080 = vmatprep.subr.bf16.mxu1 %v5078_v8  ;;  %v5108_v7 = vld [vmem:[#allocation8 + $0x22c] ss:$16 sps:$4 sm:$0xff]  }
 0x1ca   :  { %1698 = vmatmul.mubr.bf16.gmra.mrb[56].mxu0 %v5658_v60  ;;  %1924 = vmatmul.mubr.bf16.gmra.mrb[56].mxu1 %v5658_v60  ;;  %v5088_v60 = vld [vmem:[#allocation8 + $0x1c8] ss:$16 sps:$4 sm:$0xff]  }
 0x1cb   :  { %1707 = vmatprep.mubr.bf16.mxu0 %v5672_v62  ;;  %1933 = vmatprep.mubr.bf16.mxu1 %v5672_v62 }
 0x1cc   :  { %2855 = vmatpush1.bf16.msra.mxu0 %v5073_v10  ;;  %3081 = vmatpush1.bf16.msra.mxu1 %v5076_v11 }
 0x1cd   :  { %2856 = vmatprep.subr.bf16.mxu0 %v5081_v12  ;;  %3082 = vmatprep.subr.bf16.mxu1 %v5084_v30 }
 0x1d0   :  { %2857 = vmatpush1.bf16.msra.mxu0 %v5079_v61  ;;  %3083 = vmatpush1.bf16.msra.mxu1 %v5082_v1 }
 0x1d1   :  { %2858 = vmatprep.subr.bf16.mxu0 %v5087_v13  ;;  %3084 = vmatprep.subr.bf16.mxu1 %v5090_v14 }
 0x1d2   :  { %1708 = vmatmul.mubr.bf16.gmra.mrb[60].mxu0 %v5670_v25  ;;  %1934 = vmatmul.mubr.bf16.gmra.mrb[60].mxu1 %v5670_v25  ;;  %v830_v25 = vld [vmem:[%s5962_s4] sm:$0xf] }
 0x1d3   :  { %v5704_v26 = vrot.slane %v830_v25, %v5549_v45  ;;  %v5707_v27 = vrot.slane %v830_v25, %v5566_v4  ;;  %v5710_v62 = vrot.slane %v830_v25, %v5554_v47  ;;  %v5713_v22 = vrot.slane %v830_v25, %v5569_v9  ;;  %v5114_v25 = vld [vmem:[#allocation8 + $0x24c] ss:$16 sps:$4 sm:$0xff]  }
 0x1d4   :  { %2859 = vmatpush1.bf16.msra.mxu0 %v5085_v15  ;;  %3085 = vmatpush1.bf16.msra.mxu1 %v5088_v60  ;;  %v5103_v60 = vld [vmem:[#allocation8 + $0x220] ss:$16 sps:$4 sm:$0xff]  }
 0x1d5   :  { %2860 = vmatprep.subr.bf16.mxu0 %v5093_v16  ;;  %3086 = vmatprep.subr.bf16.mxu1 %v5096_v18  ;;  %v5106_v16 = vld [vmem:[#allocation8 + $0x228] ss:$16 sps:$4 sm:$0xff]   ;;  %v5111_v18 = vld [vmem:[#allocation8 + $0x244] ss:$16 sps:$4 sm:$0xff]  }
 0x1d8   :  { %2861 = vmatpush1.bf16.msra.mxu0 %v5091_v19  ;;  %3087 = vmatpush1.bf16.msra.mxu1 %v5094_v21 }
 0x1d9   :  { %2943 = vmatprep.subr.bf16.mxu0 %v5099_v24  ;;  %3169 = vmatprep.subr.bf16.mxu1 %v5102_v17 }
 0x26d   :  { %v1639_v48 = vpop.f32.mrb[32].mxu0  ;;  %v1865_v41 = vpop.f32.mrb[32].mxu1 }
 0x26e   :  { %v4486_v28 = vadd.f32 %v1639_v48, %v5704_v26  ;;  %v4518_v29 = vadd.f32 %v1865_v41, %v5707_v27  ;;  %v1641_v31 = vpop.f32.mrb[33].mxu0  ;;  %v1867_v33 = vpop.f32.mrb[33].mxu1 }
 0x26f   :  { %v4487_v49 = vadd.f32 %v1641_v31, %v5710_v62  ;;  %v4519_v34 = vadd.f32 %v1867_v33, %v5713_v22  ;;  %v1643_v35 = vpop.f32.mrb[34].mxu0  ;;  %v1869_v36 = vpop.f32.mrb[34].mxu1 }
 0x270   :  { %v4488_v39 = vadd.f32 %v1643_v35, %v5704_v26  ;;  %v4520_v23 = vadd.f32 %v1869_v36, %v5707_v27  ;;  %v1645_v37 = vpop.f32.mrb[35].mxu0  ;;  %v1871_v38 = vpop.f32.mrb[35].mxu1  ;;  %v1944_v42 = vmax.f32 %v4486_v28, 0.0  ;;  %v1946_v43 = vmax.f32 %v4518_v29, 0.0 }
 0x271   :  { %v4489_v40 = vadd.f32 %v1645_v37, %v5710_v62  ;;  %v4521_v0 = vadd.f32 %v1871_v38, %v5713_v22  ;;  %v1945_v46 = vmax.f32 %v4487_v49, 0.0  ;;  %v1947_v51 = vmax.f32 %v4519_v34, 0.0 }
 0x272   :  { %v1948_v20 = vmax.f32 %v4488_v39, 0.0  ;;  %v1950_v3 = vmax.f32 %v4520_v23, 0.0  ;;  %v5109_v39 = vld [vmem:[#allocation8 + $0x240] ss:$16 sps:$4 sm:$0xff]   ;;  %v5112_v23 = vld [vmem:[#allocation8 + $0x248] ss:$16 sps:$4 sm:$0xff]  }
 0x273   :  { %v1949_v52 = vmax.f32 %v4489_v40, 0.0  ;;  %v1951_v53 = vmax.f32 %v4521_v0, 0.0 }
 0x274   :  { %v2008_v54 = vpack.c.bf16 %v1948_v20, %v1944_v42  ;;  %v5723_v55 = vpack.c.bf16 %v1950_v3, %v1946_v43  ;;  %v5117_v42 = vld [vmem:[#allocation8 + $0x264] ss:$16 sps:$4 sm:$0xff]   ;;  %v5120_v43 = vld [vmem:[#allocation8 + $0x26c] ss:$16 sps:$4 sm:$0xff]  }
 0x275   :  { %v2009_v63 = vpack.c.bf16 %v1949_v52, %v1945_v46  ;;  %v5725_v50 = vpack.c.bf16 %v1951_v53, %v1947_v51  ;;  %v1649_v56 = vpop.f32.mrb[36].mxu0  ;;  %v1875_v57 = vpop.f32.mrb[36].mxu1 }
 0x276   :  { %v4490_v2 = vadd.f32 %v1649_v56, %v5704_v26  ;;  %v4522_v5 = vadd.f32 %v1875_v57, %v5707_v27  ;;  %v1651_v44 = vpop.f32.mrb[37].mxu0  ;;  %v1877_v32 = vpop.f32.mrb[37].mxu1 }
 0x277   :  { %v4491_v8 = vadd.f32 %v1651_v44, %v5710_v62  ;;  %v4523_v10 = vadd.f32 %v1877_v32, %v5713_v22  ;;  %v1653_v11 = vpop.f32.mrb[38].mxu0  ;;  %v1879_v12 = vpop.f32.mrb[38].mxu1  ;;  %2862 = vmatprep.mubr.bf16.mxu0 %v2009_v63  ;;  %3088 = vmatprep.mubr.bf16.mxu1 %v2009_v63 }
 0x278   :  { %v4492_v30 = vadd.f32 %v1653_v11, %v5704_v26  ;;  %v4524_v61 = vadd.f32 %v1879_v12, %v5707_v27  ;;  %v1655_v1 = vpop.f32.mrb[39].mxu0  ;;  %v1881_v13 = vpop.f32.mrb[39].mxu1  ;;  %2863 = vmatmul.mubr.bf16.vlgmr.msra.gmra.mrb[64].mxu0 %v2008_v54  ;;  %3089 = vmatmul.mubr.bf16.vlgmr.msra.gmra.mrb[64].mxu1 %v2008_v54  ;;  %v1952_v19 = vmax.f32 %v4490_v2, 0.0  ;;  %v1954_v21 = vmax.f32 %v4522_v5, 0.0  ;;  %v5123_v2 = vld [vmem:[#allocation8 + $0x284] ss:$16 sps:$4 sm:$0xff]  }
 0x279   :  { %v4493_v14 = vadd.f32 %v1655_v1, %v5710_v62  ;;  %v4525_v15 = vadd.f32 %v1881_v13, %v5713_v22  ;;  %2944 = vmatpush1.bf16.msra.mxu0 %v5097_v58  ;;  %3170 = vmatpush1.bf16.msra.mxu1 %v5100_v59  ;;  %v1953_v48 = vmax.f32 %v4491_v8, 0.0  ;;  %v1955_v41 = vmax.f32 %v4523_v10, 0.0  ;;  %v5115_v58 = vld [vmem:[#allocation8 + $0x260] ss:$16 sps:$4 sm:$0xff]   ;;  %v5118_v59 = vld [vmem:[#allocation8 + $0x268] ss:$16 sps:$4 sm:$0xff]  }
 0x27a   :  { %v1956_v24 = vmax.f32 %v4492_v30, 0.0  ;;  %v1958_v17 = vmax.f32 %v4524_v61, 0.0  ;;  %2945 = vmatprep.subr.bf16.mxu0 %v5105_v6  ;;  %3171 = vmatprep.subr.bf16.mxu1 %v5108_v7  ;;  %v5126_v7 = vld [vmem:[#allocation8 + $0x28c] ss:$16 sps:$4 sm:$0xff]  }
 0x27b   :  { %v1957_v28 = vmax.f32 %v4493_v14, 0.0  ;;  %v1959_v29 = vmax.f32 %v4525_v15, 0.0 }
 0x27c   :  { %v2012_v31 = vpack.c.bf16 %v1956_v24, %v1952_v19  ;;  %v5735_v33 = vpack.c.bf16 %v1958_v17, %v1954_v21  ;;  %v5129_v17 = vld [vmem:[#allocation8 + $0x2a4] ss:$16 sps:$4 sm:$0xff]  }
 0x27d   :  { %v2013_v49 = vpack.c.bf16 %v1957_v28, %v1953_v48  ;;  %v5737_v34 = vpack.c.bf16 %v1959_v29, %v1955_v41  ;;  %2946 = vmatpush1.bf16.msra.mxu0 %v5103_v60  ;;  %v1659_v35 = vpop.f32.mrb[40].mxu0  ;;  %v1885_v36 = vpop.f32.mrb[40].mxu1  ;;  %3172 = vmatpush1.bf16.msra.mxu1 %v5106_v16  ;;  %v5121_v60 = vld [vmem:[#allocation8 + $0x280] ss:$16 sps:$4 sm:$0xff]   ;;  %v5124_v16 = vld [vmem:[#allocation8 + $0x288] ss:$16 sps:$4 sm:$0xff]  }
 0x27e   :  { %v4494_v37 = vadd.f32 %v1659_v35, %v5704_v26  ;;  %v4526_v38 = vadd.f32 %v1885_v36, %v5707_v27  ;;  %v1661_v40 = vpop.f32.mrb[41].mxu0  ;;  %v1887_v0 = vpop.f32.mrb[41].mxu1  ;;  %2947 = vmatprep.subr.bf16.mxu0 %v5111_v18  ;;  %3173 = vmatprep.subr.bf16.mxu1 %v5114_v25  ;;  %v5132_v25 = vld [vmem:[#allocation8 + $0x2ac] ss:$16 sps:$4 sm:$0xff]  }
 0x27f   :  { %v4495_v20 = vadd.f32 %v1661_v40, %v5710_v62  ;;  %v4527_v3 = vadd.f32 %v1887_v0, %v5713_v22  ;;  %v1663_v46 = vpop.f32.mrb[42].mxu0  ;;  %v1889_v51 = vpop.f32.mrb[42].mxu1  ;;  %2872 = vmatprep.mubr.bf16.mxu0 %v2013_v49  ;;  %3098 = vmatprep.mubr.bf16.mxu1 %v2013_v49  ;;  %v5135_v40 = vld [vmem:[#allocation8 + $0x2c4] ss:$16 sps:$4 sm:$0xff]  }
 0x280   :  { %v4496_v52 = vadd.f32 %v1663_v46, %v5704_v26  ;;  %v4528_v53 = vadd.f32 %v1889_v51, %v5707_v27  ;;  %v1665_v54 = vpop.f32.mrb[43].mxu0  ;;  %v1891_v63 = vpop.f32.mrb[43].mxu1  ;;  %2873 = vmatmul.mubr.bf16.gmra.mrb[68].mxu0 %v2012_v31  ;;  %3099 = vmatmul.mubr.bf16.gmra.mrb[68].mxu1 %v2012_v31  ;;  %v1960_v5 = vmax.f32 %v4494_v37, 0.0  ;;  %v1962_v44 = vmax.f32 %v4526_v38, 0.0  ;;  %v5127_v37 = vld [vmem:[#allocation8 + $0x2a0] ss:$16 sps:$4 sm:$0xff]  }
 0x281   :  { %v4497_v56 = vadd.f32 %v1665_v54, %v5710_v62  ;;  %v4529_v57 = vadd.f32 %v1891_v63, %v5713_v22  ;;  %2948 = vmatpush1.bf16.msra.mxu0 %v5109_v39  ;;  %3174 = vmatpush1.bf16.msra.mxu1 %v5112_v23  ;;  %v1961_v8 = vmax.f32 %v4495_v20, 0.0  ;;  %v1963_v10 = vmax.f32 %v4527_v3, 0.0  ;;  %v5130_v38 = vld [vmem:[#allocation8 + $0x2a8] ss:$16 sps:$4 sm:$0xff]   ;;  %v5138_v3 = vld [vmem:[#allocation8 + $0x2cc] ss:$16 sps:$4 sm:$0xff]  }
 0x282   :  { %v1964_v32 = vmax.f32 %v4496_v52, 0.0  ;;  %v1966_v6 = vmax.f32 %v4528_v53, 0.0  ;;  %2949 = vmatprep.subr.bf16.mxu0 %v5117_v42  ;;  %3175 = vmatprep.subr.bf16.mxu1 %v5120_v43 }
 0x283   :  { %v1965_v11 = vmax.f32 %v4497_v56, 0.0  ;;  %v1967_v12 = vmax.f32 %v4529_v57, 0.0 }
 0x284   :  { %v2016_v30 = vpack.c.bf16 %v1964_v32, %v1960_v5  ;;  %v5747_v61 = vpack.c.bf16 %v1966_v6, %v1962_v44  ;;  %v5136_v5 = vld [vmem:[#allocation8 + $0x2c8] ss:$16 sps:$4 sm:$0xff]  }
 0x285   :  { %v2017_v1 = vpack.c.bf16 %v1965_v11, %v1961_v8  ;;  %v5749_v13 = vpack.c.bf16 %v1967_v12, %v1963_v10  ;;  %2950 = vmatpush1.bf16.msra.mxu0 %v5115_v58  ;;  %v1669_v14 = vpop.f32.mrb[44].mxu0  ;;  %v1895_v15 = vpop.f32.mrb[44].mxu1  ;;  %3176 = vmatpush1.bf16.msra.mxu1 %v5118_v59  ;;  %v5141_v8 = vld [vmem:[#allocation8 + $0x2e4] ss:$16 sps:$4 sm:$0xff]   ;;  %v5144_v10 = vld [vmem:[#allocation8 + $0x2ec] ss:$16 sps:$4 sm:$0xff]  }
 0x286   :  { %v4498_v18 = vadd.f32 %v1669_v14, %v5704_v26  ;;  %v4530_v19 = vadd.f32 %v1895_v15, %v5707_v27  ;;  %v1671_v21 = vpop.f32.mrb[45].mxu0  ;;  %v1897_v24 = vpop.f32.mrb[45].mxu1  ;;  %2951 = vmatprep.subr.bf16.mxu0 %v5123_v2  ;;  %3177 = vmatprep.subr.bf16.mxu1 %v5126_v7  ;;  %v5133_v2 = vld [vmem:[#allocation8 + $0x2c0] ss:$16 sps:$4 sm:$0xff]  }
 0x287   :  { %v4499_v48 = vadd.f32 %v1671_v21, %v5710_v62  ;;  %v4531_v41 = vadd.f32 %v1897_v24, %v5713_v22  ;;  %v1673_v28 = vpop.f32.mrb[46].mxu0  ;;  %v1899_v29 = vpop.f32.mrb[46].mxu1  ;;  %2882 = vmatprep.mubr.bf16.mxu0 %v2017_v1  ;;  %3108 = vmatprep.mubr.bf16.mxu1 %v2017_v1  ;;  %v5139_v21 = vld [vmem:[#allocation8 + $0x2e0] ss:$16 sps:$4 sm:$0xff]   ;;  %v5142_v24 = vld [vmem:[#allocation8 + $0x2e8] ss:$16 sps:$4 sm:$0xff]  }
 0x288   :  { %v4500_v31 = vadd.f32 %v1673_v28, %v5704_v26  ;;  %v4532_v49 = vadd.f32 %v1899_v29, %v5707_v27  ;;  %v1675_v35 = vpop.f32.mrb[47].mxu0  ;;  %v1901_v36 = vpop.f32.mrb[47].mxu1  ;;  %2883 = vmatmul.mubr.bf16.gmra.mrb[72].mxu0 %v2016_v30  ;;  %3109 = vmatmul.mubr.bf16.gmra.mrb[72].mxu1 %v2016_v30  ;;  %v1968_v0 = vmax.f32 %v4498_v18, 0.0  ;;  %v1970_v42 = vmax.f32 %v4530_v19, 0.0  ;;  %v5150_v29 = vld [vmem:[#allocation8 + $0x30c] ss:$16 sps:$4 sm:$0xff]  }
 0x289   :  { %v4501_v39 = vadd.f32 %v1675_v35, %v5710_v62  ;;  %v4533_v23 = vadd.f32 %v1901_v36, %v5713_v22  ;;  %2952 = vmatpush1.bf16.msra.mxu0 %v5121_v60  ;;  %3178 = vmatpush1.bf16.msra.mxu1 %v5124_v16  ;;  %v1969_v46 = vmax.f32 %v4499_v48, 0.0  ;;  %v1971_v51 = vmax.f32 %v4531_v41, 0.0 }
 0x28a   :  { %v1972_v43 = vmax.f32 %v4500_v31, 0.0  ;;  %v1974_v20 = vmax.f32 %v4532_v49, 0.0  ;;  %2953 = vmatprep.subr.bf16.mxu0 %v5129_v17  ;;  %3179 = vmatprep.subr.bf16.mxu1 %v5132_v25  ;;  %v5147_v17 = vld [vmem:[#allocation8 + $0x304] ss:$16 sps:$4 sm:$0xff]  }
 0x28b   :  { %v1973_v52 = vmax.f32 %v4501_v39, 0.0  ;;  %v1975_v53 = vmax.f32 %v4533_v23, 0.0 }
 0x28c   :  { %v2020_v54 = vpack.c.bf16 %v1972_v43, %v1968_v0  ;;  %v5759_v63 = vpack.c.bf16 %v1974_v20, %v1970_v42  ;;  %v5145_v42 = vld [vmem:[#allocation8 + $0x300] ss:$16 sps:$4 sm:$0xff]   ;;  %v5148_v43 = vld [vmem:[#allocation8 + $0x308] ss:$16 sps:$4 sm:$0xff]  }
 0x28d   :  { %v2021_v56 = vpack.c.bf16 %v1973_v52, %v1969_v46  ;;  %v5761_v57 = vpack.c.bf16 %v1975_v53, %v1971_v51  ;;  %2954 = vmatpush1.bf16.msra.mxu0 %v5127_v37  ;;  %v1679_v58 = vpop.f32.mrb[48].mxu0  ;;  %v1905_v59 = vpop.f32.mrb[48].mxu1  ;;  %3180 = vmatpush1.bf16.msra.mxu1 %v5130_v38  ;;  %v5153_v52 = vld [vmem:[#allocation8 + $0x324] ss:$16 sps:$4 sm:$0xff]   ;;  %v5156_v53 = vld [vmem:[#allocation8 + $0x32c] ss:$16 sps:$4 sm:$0xff]  }
 0x28e   :  { %v4502_v44 = vadd.f32 %v1679_v58, %v5704_v26  ;;  %v4534_v32 = vadd.f32 %v1905_v59, %v5707_v27  ;;  %v1681_v6 = vpop.f32.mrb[49].mxu0  ;;  %v1907_v7 = vpop.f32.mrb[49].mxu1  ;;  %2955 = vmatprep.subr.bf16.mxu0 %v5135_v40  ;;  %3181 = vmatprep.subr.bf16.mxu1 %v5138_v3 }
 0x28f   :  { %v4503_v11 = vadd.f32 %v1681_v6, %v5710_v62  ;;  %v4535_v12 = vadd.f32 %v1907_v7, %v5713_v22  ;;  %v1683_v30 = vpop.f32.mrb[50].mxu0  ;;  %v1909_v1 = vpop.f32.mrb[50].mxu1  ;;  %2892 = vmatprep.mubr.bf16.mxu0 %v2021_v56  ;;  %3118 = vmatprep.mubr.bf16.mxu1 %v2021_v56 }
 0x290   :  { %v4504_v14 = vadd.f32 %v1683_v30, %v5704_v26  ;;  %v4536_v15 = vadd.f32 %v1909_v1, %v5707_v27  ;;  %v1685_v60 = vpop.f32.mrb[51].mxu0  ;;  %v1911_v16 = vpop.f32.mrb[51].mxu1  ;;  %2893 = vmatmul.mubr.bf16.gmra.mrb[76].mxu0 %v2020_v54  ;;  %3119 = vmatmul.mubr.bf16.gmra.mrb[76].mxu1 %v2020_v54  ;;  %v1976_v25 = vmax.f32 %v4502_v44, 0.0  ;;  %v1978_v48 = vmax.f32 %v4534_v32, 0.0 }
 0x291   :  { %v4505_v18 = vadd.f32 %v1685_v60, %v5710_v62  ;;  %v4537_v19 = vadd.f32 %v1911_v16, %v5713_v22  ;;  %2956 = vmatpush1.bf16.msra.mxu0 %v5133_v2  ;;  %3182 = vmatpush1.bf16.msra.mxu1 %v5136_v5  ;;  %v1977_v31 = vmax.f32 %v4503_v11, 0.0  ;;  %v1979_v49 = vmax.f32 %v4535_v12, 0.0  ;;  %v5159_v11 = vld [vmem:[#allocation8 + $0x344] ss:$16 sps:$4 sm:$0xff]  }
 0x292   :  { %v1980_v41 = vmax.f32 %v4504_v14, 0.0  ;;  %v1982_v28 = vmax.f32 %v4536_v15, 0.0  ;;  %2957 = vmatprep.subr.bf16.mxu0 %v5141_v8  ;;  %3183 = vmatprep.subr.bf16.mxu1 %v5144_v10  ;;  %v5151_v8 = vld [vmem:[#allocation8 + $0x320] ss:$16 sps:$4 sm:$0xff]   ;;  %v5154_v10 = vld [vmem:[#allocation8 + $0x328] ss:$16 sps:$4 sm:$0xff]  }
 0x293   :  { %v1981_v35 = vmax.f32 %v4505_v18, 0.0  ;;  %v1983_v36 = vmax.f32 %v4537_v19, 0.0  ;;  %v5162_v15 = vld [vmem:[#allocation8 + $0x34c] ss:$16 sps:$4 sm:$0xff]  }
 0x294   :  { %v2024_v39 = vpack.c.bf16 %v1980_v41, %v1976_v25  ;;  %v5771_v23 = vpack.c.bf16 %v1982_v28, %v1978_v48  ;;  %v5157_v28 = vld [vmem:[#allocation8 + $0x340] ss:$16 sps:$4 sm:$0xff]  }
 0x295   :  { %v2025_v37 = vpack.c.bf16 %v1981_v35, %v1977_v31  ;;  %v5773_v38 = vpack.c.bf16 %v1983_v36, %v1979_v49  ;;  %2958 = vmatpush1.bf16.msra.mxu0 %v5139_v21  ;;  %v1689_v40 = vpop.f32.mrb[52].mxu0  ;;  %v1915_v0 = vpop.f32.mrb[52].mxu1  ;;  %3184 = vmatpush1.bf16.msra.mxu1 %v5142_v24 }
 0x296   :  { %v4506_v20 = vadd.f32 %v1689_v40, %v5704_v26  ;;  %v4538_v3 = vadd.f32 %v1915_v0, %v5707_v27  ;;  %v1691_v46 = vpop.f32.mrb[53].mxu0  ;;  %v1917_v51 = vpop.f32.mrb[53].mxu1  ;;  %2959 = vmatprep.subr.bf16.mxu0 %v5147_v17  ;;  %3185 = vmatprep.subr.bf16.mxu1 %v5150_v29  ;;  %v5160_v29 = vld [vmem:[#allocation8 + $0x348] ss:$16 sps:$4 sm:$0xff]  }
 0x297   :  { %v4507_v54 = vadd.f32 %v1691_v46, %v5710_v62  ;;  %v4539_v56 = vadd.f32 %v1917_v51, %v5713_v22  ;;  %v1693_v58 = vpop.f32.mrb[54].mxu0  ;;  %v1919_v59 = vpop.f32.mrb[54].mxu1  ;;  %2902 = vmatprep.mubr.bf16.mxu0 %v2025_v37  ;;  %3128 = vmatprep.mubr.bf16.mxu1 %v2025_v37  ;;  %v5168_v37 = vld [vmem:[#allocation8 + $0x36c] ss:$16 sps:$4 sm:$0xff]  }
 0x298   :  { %v4508_v2 = vadd.f32 %v1693_v58, %v5704_v26  ;;  %v4540_v5 = vadd.f32 %v1919_v59, %v5707_v27  ;;  %v1695_v44 = vpop.f32.mrb[55].mxu0  ;;  %v1921_v32 = vpop.f32.mrb[55].mxu1  ;;  %2903 = vmatmul.mubr.bf16.gmra.mrb[80].mxu0 %v2024_v39  ;;  %3129 = vmatmul.mubr.bf16.gmra.mrb[80].mxu1 %v2024_v39  ;;  %v1984_v12 = vmax.f32 %v4506_v20, 0.0  ;;  %v1986_v30 = vmax.f32 %v4538_v3, 0.0  ;;  %v5165_v39 = vld [vmem:[#allocation8 + $0x364] ss:$16 sps:$4 sm:$0xff]  }
 0x299   :  { %v4509_v6 = vadd.f32 %v1695_v44, %v5710_v62  ;;  %v4541_v7 = vadd.f32 %v1921_v32, %v5713_v22  ;;  %2960 = vmatpush1.bf16.msra.mxu0 %v5145_v42  ;;  %3186 = vmatpush1.bf16.msra.mxu1 %v5148_v43  ;;  %v1985_v60 = vmax.f32 %v4507_v54, 0.0  ;;  %v1987_v16 = vmax.f32 %v4539_v56, 0.0  ;;  %v5163_v54 = vld [vmem:[#allocation8 + $0x360] ss:$16 sps:$4 sm:$0xff]   ;;  %v5166_v56 = vld [vmem:[#allocation8 + $0x368] ss:$16 sps:$4 sm:$0xff]  }
 0x29a   :  { %v1988_v1 = vmax.f32 %v4508_v2, 0.0  ;;  %v1990_v14 = vmax.f32 %v4540_v5, 0.0  ;;  %2961 = vmatprep.subr.bf16.mxu0 %v5153_v52  ;;  %3187 = vmatprep.subr.bf16.mxu1 %v5156_v53  ;;  %v5171_v58 = vld [vmem:[#allocation8 + $0x384] ss:$16 sps:$4 sm:$0xff]   ;;  %v5174_v32 = vld [vmem:[#allocation8 + $0x38c] ss:$16 sps:$4 sm:$0xff]  }
 0x29b   :  { %v1989_v18 = vmax.f32 %v4509_v6, 0.0  ;;  %v1991_v19 = vmax.f32 %v4541_v7, 0.0 }
 0x29c   :  { %v2028_v21 = vpack.c.bf16 %v1988_v1, %v1984_v12  ;;  %v5783_v24 = vpack.c.bf16 %v1990_v14, %v1986_v30 }
 0x29d   :  { %v2029_v17 = vpack.c.bf16 %v1989_v18, %v1985_v60  ;;  %v5785_v25 = vpack.c.bf16 %v1991_v19, %v1987_v16  ;;  %2962 = vmatpush1.bf16.msra.mxu0 %v5151_v8  ;;  %v1699_v48 = vpop.f32.mrb[56].mxu0  ;;  %v1925_v41 = vpop.f32.mrb[56].mxu1  ;;  %3188 = vmatpush1.bf16.msra.mxu1 %v5154_v10  ;;  %v5169_v60 = vld [vmem:[#allocation8 + $0x380] ss:$16 sps:$4 sm:$0xff]   ;;  %v5172_v16 = vld [vmem:[#allocation8 + $0x388] ss:$16 sps:$4 sm:$0xff]  }
 0x29e   :  { %v4510_v31 = vadd.f32 %v1699_v48, %v5704_v26  ;;  %v4542_v49 = vadd.f32 %v1925_v41, %v5707_v27  ;;  %v1701_v35 = vpop.f32.mrb[57].mxu0  ;;  %v1927_v36 = vpop.f32.mrb[57].mxu1  ;;  %2963 = vmatprep.subr.bf16.mxu0 %v5159_v11  ;;  %3189 = vmatprep.subr.bf16.mxu1 %v5162_v15  ;;  %v5177_v48 = vld [vmem:[#allocation8 + $0x3a4] ss:$16 sps:$4 sm:$0xff]   ;;  %v5180_v41 = vld [vmem:[#allocation8 + $0x3ac] ss:$16 sps:$4 sm:$0xff]  }
 0x29f   :  { %v4511_v40 = vadd.f32 %v1701_v35, %v5710_v62  ;;  %v4543_v0 = vadd.f32 %v1927_v36, %v5713_v22  ;;  %v1703_v42 = vpop.f32.mrb[58].mxu0  ;;  %v1929_v43 = vpop.f32.mrb[58].mxu1  ;;  %2912 = vmatprep.mubr.bf16.mxu0 %v2029_v17  ;;  %3138 = vmatprep.mubr.bf16.mxu1 %v2029_v17 }
 0x2a0   :  { %v4512_v20 = vadd.f32 %v1703_v42, %v5704_v26  ;;  %v4544_v3 = vadd.f32 %v1929_v43, %v5707_v27  ;;  %v1705_v46 = vpop.f32.mrb[59].mxu0  ;;  %v1931_v51 = vpop.f32.mrb[59].mxu1  ;;  %2913 = vmatmul.mubr.bf16.gmra.mrb[84].mxu0 %v2028_v21  ;;  %3139 = vmatmul.mubr.bf16.gmra.mrb[84].mxu1 %v2028_v21  ;;  %v1992_v59 = vmax.f32 %v4510_v31, 0.0  ;;  %v1994_v2 = vmax.f32 %v4542_v49, 0.0  ;;  %v5175_v42 = vld [vmem:[#allocation8 + $0x3a0] ss:$16 sps:$4 sm:$0xff]  }
 0x2a1   :  { %v4513_v52 = vadd.f32 %v1705_v46, %v5710_v62  ;;  %v4545_v53 = vadd.f32 %v1931_v51, %v5713_v22  ;;  %2964 = vmatpush1.bf16.msra.mxu0 %v5157_v28  ;;  %3190 = vmatpush1.bf16.msra.mxu1 %v5160_v29  ;;  %v1993_v6 = vmax.f32 %v4511_v40, 0.0  ;;  %v1995_v7 = vmax.f32 %v4543_v0, 0.0  ;;  %v5178_v43 = vld [vmem:[#allocation8 + $0x3a8] ss:$16 sps:$4 sm:$0xff]  }
 0x2a2   :  { %v1996_v5 = vmax.f32 %v4512_v20, 0.0  ;;  %v1998_v44 = vmax.f32 %v4544_v3, 0.0  ;;  %2965 = vmatprep.subr.bf16.mxu0 %v5165_v39  ;;  %3191 = vmatprep.subr.bf16.mxu1 %v5168_v37  ;;  %v5183_v20 = vld [vmem:[#allocation8 + $0x3c4] ss:$16 sps:$4 sm:$0xff]  }
 0x2a3   :  { %v1997_v8 = vmax.f32 %v4513_v52, 0.0  ;;  %v1999_v10 = vmax.f32 %v4545_v53, 0.0 }
 0x2a4   :  { %v2032_v11 = vpack.c.bf16 %v1996_v5, %v1992_v59  ;;  %v5795_v12 = vpack.c.bf16 %v1998_v44, %v1994_v2  ;;  %v5181_v2 = vld [vmem:[#allocation8 + $0x3c0] ss:$16 sps:$4 sm:$0xff]   ;;  %v5184_v5 = vld [vmem:[#allocation8 + $0x3c8] ss:$16 sps:$4 sm:$0xff]   ;;  %v5189_v44 = vld [vmem:[#allocation8 + $0x3e4] ss:$16 sps:$4 sm:$0xff]  }
 0x2a5   :  { %v2033_v30 = vpack.c.bf16 %v1997_v8, %v1993_v6  ;;  %v5797_v1 = vpack.c.bf16 %v1999_v10, %v1995_v7  ;;  %2966 = vmatpush1.bf16.msra.mxu0 %v5163_v54  ;;  %v1709_v14 = vpop.f32.mrb[60].mxu0  ;;  %v1935_v15 = vpop.f32.mrb[60].mxu1  ;;  %3192 = vmatpush1.bf16.msra.mxu1 %v5166_v56  ;;  %v5187_v6 = vld [vmem:[#allocation8 + $0x3e0] ss:$16 sps:$4 sm:$0xff]   ;;  %v5190_v7 = vld [vmem:[#allocation8 + $0x3e8] ss:$16 sps:$4 sm:$0xff]  }
 0x2a6   :  { %v4514_v18 = vadd.f32 %v1709_v14, %v5704_v26  ;;  %v4546_v19 = vadd.f32 %v1935_v15, %v5707_v27  ;;  %v1711_v21 = vpop.f32.mrb[61].mxu0  ;;  %v1937_v17 = vpop.f32.mrb[61].mxu1  ;;  %2967 = vmatprep.subr.bf16.mxu0 %v5171_v58  ;;  %3193 = vmatprep.subr.bf16.mxu1 %v5174_v32  ;;  %v5192_v32 = vld [vmem:[#allocation8 + $0x3ec] ss:$16 sps:$4 sm:$0xff]   ;;  %v5193_v8 = vld [vmem:[#allocation10 + $0x40] sm:$0xff]  }
 0x2a7   :  { %v4515_v28 = vadd.f32 %v1711_v21, %v5710_v62  ;;  %v4547_v29 = vadd.f32 %v1937_v17, %v5713_v22  ;;  %v1713_v31 = vpop.f32.mrb[62].mxu0  ;;  %v1939_v49 = vpop.f32.mrb[62].mxu1  ;;  %2922 = vmatprep.mubr.bf16.mxu0 %v2033_v30  ;;  %3148 = vmatprep.mubr.bf16.mxu1 %v2033_v30  ;;  %v5195_v10 = vld [vmem:[#allocation10 + $0xc0] sm:$0xff]   ;;  %v5197_v14 = vld [vmem:[#allocation10 + $0x48] sm:$0xff]   ;;  %v5204_v21 = vld [vmem:[#allocation10 + $0x90] sm:$0xff]  }
 0x2a8   :  { %v4516_v35 = vadd.f32 %v1713_v31, %v5704_v26  ;;  %v4548_v36 = vadd.f32 %v1939_v49, %v5707_v27  ;;  %v1715_v39 = vpop.f32.mrb[63].mxu0  ;;  %v1941_v37 = vpop.f32.mrb[63].mxu1  ;;  %2923 = vmatmul.mubr.bf16.gmra.mrb[88].mxu0 %v2032_v11  ;;  %3149 = vmatmul.mubr.bf16.gmra.mrb[88].mxu1 %v2032_v11  ;;  %v2000_v3 = vmax.f32 %v4514_v18, 0.0  ;;  %v2002_v46 = vmax.f32 %v4546_v19, 0.0  ;;  %v5186_v26 = vld [vmem:[#allocation8 + $0x3cc] ss:$16 sps:$4 sm:$0xff]  }
 0x2a9   :  { %v4517_v40 = vadd.f32 %v1715_v39, %v5710_v62  ;;  %v4549_v0 = vadd.f32 %v1941_v37, %v5713_v22  ;;  %2968 = vmatpush1.bf16.msra.mxu0 %v5169_v60  ;;  %3194 = vmatpush1.bf16.msra.mxu1 %v5172_v16  ;;  %v2001_v27 = vmax.f32 %v4515_v28, 0.0  ;;  %v2003_v53 = vmax.f32 %v4547_v29, 0.0  ;;  %v5194_v11 = vld [vmem:[#allocation10] sm:$0xff]   ;;  %v5199_v15 = vld [vmem:[#allocation10 + $0xc8] sm:$0xff]   ;;  %v5201_v16 = vld [vmem:[#allocation10 + $0x50] sm:$0xff]  }
 0x2aa   :  { %v2004_v51 = vmax.f32 %v4516_v35, 0.0  ;;  %v2006_v52 = vmax.f32 %v4548_v36, 0.0  ;;  %2969 = vmatprep.subr.bf16.mxu0 %v5177_v48  ;;  %3195 = vmatprep.subr.bf16.mxu1 %v5180_v41  ;;  %v5196_v30 = vld [vmem:[#allocation10 + $0x80] sm:$0xff]   ;;  %v5200_v60 = vld [vmem:[#allocation10 + $0x88] sm:$0xff]   ;;  %v5203_v18 = vld [vmem:[#allocation10 + $0xd0] sm:$0xff]  }
 0x2ab   :  { %v2005_v54 = vmax.f32 %v4517_v40, 0.0  ;;  %v2007_v56 = vmax.f32 %v4549_v0, 0.0  ;;  %v5202_v19 = vld [vmem:[#allocation10 + $0x10] sm:$0xff]   ;;  %v5205_v17 = vld [vmem:[#allocation10 + $0x58] sm:$0xff]   ;;  %v5209_v41 = vld [vmem:[#allocation10 + $0x60] sm:$0xff]  }
 0x2ac   :  { %v2036_v58 = vpack.c.bf16 %v2004_v51, %v2000_v3  ;;  %v5807_v62 = vpack.c.bf16 %v2006_v52, %v2002_v46  ;;  %v5208_v48 = vld [vmem:[#allocation10 + $0x98] sm:$0xff]   ;;  %v5211_v28 = vld [vmem:[#allocation10 + $0xe0] sm:$0xff]   ;;  %v5213_v49 = vld [vmem:[#allocation10 + $0x68] sm:$0xff]  }
 0x2ad   :  { %v2037_v22 = vpack.c.bf16 %v2005_v54, %v2001_v27  ;;  %v5809_v59 = vpack.c.bf16 %v2007_v56, %v2003_v53  ;;  %2970 = vmatpush1.bf16.msra.mxu0 %v5175_v42  ;;  %3196 = vmatpush1.bf16.msra.mxu1 %v5178_v43  ;;  %v5210_v29 = vld [vmem:[#allocation10 + $0x20] sm:$0xff]   ;;  %v5216_v35 = vld [vmem:[#allocation10 + $0xa8] sm:$0xff]   ;;  %v5217_v36 = vld [vmem:[#allocation10 + $0x70] sm:$0xff]  }
 0x2ae   :  { %2971 = vmatprep.subr.bf16.mxu0 %v5183_v20  ;;  %3197 = vmatprep.subr.bf16.mxu1 %v5186_v26  ;;  %v5212_v31 = vld [vmem:[#allocation10 + $0xa0] sm:$0xff]   ;;  %v5219_v39 = vld [vmem:[#allocation10 + $0xf0] sm:$0xff]  }
 0x2af   :  { %2932 = vmatprep.mubr.bf16.mxu0 %v2037_v22  ;;  %3158 = vmatprep.mubr.bf16.mxu1 %v2037_v22  ;;  %v5218_v37 = vld [vmem:[#allocation10 + $0x30] sm:$0xff]  }
 0x2b0   :  { %2933 = vmatmul.mubr.bf16.gmra.mrb[92].mxu0 %v2036_v58  ;;  %3159 = vmatmul.mubr.bf16.gmra.mrb[92].mxu1 %v2036_v58  ;;  %v5220_v40 = vld [vmem:[#allocation10 + $0xb0] sm:$0xff]  }
 0x2b1   :  { %2972 = vmatpush1.bf16.msra.mxu0 %v5181_v2  ;;  %2975 = vmatprep.mubr.bf16.mxu0 %v5725_v50 }
 0x2b2   :  { %3198 = vmatpush1.bf16.msra.mxu1 %v5184_v5  ;;  %3201 = vmatprep.mubr.bf16.mxu1 %v5725_v50  ;;  %v5198_v50 = vld [vmem:[#allocation10 + $0x8] sm:$0xff]  }
 0x2b3   :  { %2973 = vmatprep.subr.bf16.mxu0 %v5189_v44  ;;  %3199 = vmatprep.subr.bf16.mxu1 %v5192_v32 }
 0x2b5   :  { %2974 = vmatpush1.bf16.msra.mxu0 %v5187_v6 }
 0x2b6   :  { %3200 = vmatpush1.bf16.msra.mxu1 %v5190_v7  ;;  %4358 = vmatprep.subr.bf16.mxu0 %v5193_v8 }
 0x2b7   :  { %4422 = vmatprep.subr.bf16.mxu1 %v5195_v10 }
 0x2b8   :  { %2976 = vmatmul.mubr.bf16.vlgmr.msra.gmra.mrb[64].mxu0 %v5723_v55 }
 0x2b9   :  { %3202 = vmatmul.mubr.bf16.vlgmr.msra.gmra.mrb[64].mxu1 %v5723_v55  ;;  %2985 = vmatprep.mubr.bf16.mxu0 %v5737_v34  ;;  %v5207_v55 = vld [vmem:[#allocation10 + $0xd8] sm:$0xff]  }
 0x2ba   :  { %3211 = vmatprep.mubr.bf16.mxu1 %v5737_v34  ;;  %4359 = vmatpush3.bf16.msra.mxu0 %v5194_v11  ;;  %v5206_v34 = vld [vmem:[#allocation10 + $0x18] sm:$0xff]  }
 0x2bb   :  { %4423 = vmatpush3.bf16.msra.mxu1 %v5196_v30  ;;  %4360 = vmatprep.subr.bf16.mxu0 %v5197_v14 }
 0x2bc   :  { %4424 = vmatprep.subr.bf16.mxu1 %v5199_v15 }
 0x2be   :  { %4361 = vmatpush3.bf16.msra.mxu0 %v5198_v50 }
 0x2bf   :  { %4425 = vmatpush3.bf16.msra.mxu1 %v5200_v60  ;;  %4362 = vmatprep.subr.bf16.mxu0 %v5201_v16 }
 0x2c0   :  { %2986 = vmatmul.mubr.bf16.gmra.mrb[68].mxu0 %v5735_v33  ;;  %4426 = vmatprep.subr.bf16.mxu1 %v5203_v18 }
 0x2c1   :  { %3212 = vmatmul.mubr.bf16.gmra.mrb[68].mxu1 %v5735_v33  ;;  %2995 = vmatprep.mubr.bf16.mxu0 %v5749_v13  ;;  %v5215_v33 = vld [vmem:[#allocation10 + $0xe8] sm:$0xff]  }
 0x2c2   :  { %3221 = vmatprep.mubr.bf16.mxu1 %v5749_v13  ;;  %4363 = vmatpush3.bf16.msra.mxu0 %v5202_v19  ;;  %v5214_v13 = vld [vmem:[#allocation10 + $0x28] sm:$0xff]  }
 0x2c3   :  { %4427 = vmatpush3.bf16.msra.mxu1 %v5204_v21  ;;  %4364 = vmatprep.subr.bf16.mxu0 %v5205_v17 }
 0x2c4   :  { %4428 = vmatprep.subr.bf16.mxu1 %v5207_v55 }
 0x2c6   :  { %4365 = vmatpush3.bf16.msra.mxu0 %v5206_v34 }
 0x2c7   :  { %4429 = vmatpush3.bf16.msra.mxu1 %v5208_v48  ;;  %4366 = vmatprep.subr.bf16.mxu0 %v5209_v41 }
 0x2c8   :  { %2996 = vmatmul.mubr.bf16.gmra.mrb[72].mxu0 %v5747_v61  ;;  %4430 = vmatprep.subr.bf16.mxu1 %v5211_v28 }
 0x2c9   :  { %3222 = vmatmul.mubr.bf16.gmra.mrb[72].mxu1 %v5747_v61  ;;  %3005 = vmatprep.mubr.bf16.mxu0 %v5761_v57  ;;  %v5221_v61 = vld [vmem:[#allocation10 + $0x78] sm:$0xff]  }
 0x2ca   :  { %3231 = vmatprep.mubr.bf16.mxu1 %v5761_v57  ;;  %4367 = vmatpush3.bf16.msra.mxu0 %v5210_v29  ;;  %v5222_v57 = vld [vmem:[#allocation10 + $0x38] sm:$0xff]  }
 0x2cb   :  { %4431 = vmatpush3.bf16.msra.mxu1 %v5212_v31  ;;  %4368 = vmatprep.subr.bf16.mxu0 %v5213_v49 }
 0x2cc   :  { %4432 = vmatprep.subr.bf16.mxu1 %v5215_v33 }
 0x2ce   :  { %4369 = vmatpush3.bf16.msra.mxu0 %v5214_v13 }
 0x2cf   :  { %4433 = vmatpush3.bf16.msra.mxu1 %v5216_v35  ;;  %4370 = vmatprep.subr.bf16.mxu0 %v5217_v36 }
 0x2d0   :  { %3006 = vmatmul.mubr.bf16.gmra.mrb[76].mxu0 %v5759_v63  ;;  %4434 = vmatprep.subr.bf16.mxu1 %v5219_v39 }
 0x2d1   :  { %3232 = vmatmul.mubr.bf16.gmra.mrb[76].mxu1 %v5759_v63  ;;  %3015 = vmatprep.mubr.bf16.mxu0 %v5773_v38  ;;  %v5223_v63 = vld [vmem:[#allocation10 + $0xf8] sm:$0xff]  }
 0x2d2   :  { %3241 = vmatprep.mubr.bf16.mxu1 %v5773_v38  ;;  %4371 = vmatpush3.bf16.msra.mxu0 %v5218_v37  ;;  %v2168_v38 = vld [vmem:[%s5964_s6] sm:$0xf] }
 0x2d3   :  { %4435 = vmatpush3.bf16.msra.mxu1 %v5220_v40  ;;  %4372 = vmatprep.subr.bf16.mxu0 %v5221_v61 }
 0x2d4   :  { %4436 = vmatprep.subr.bf16.mxu1 %v5223_v63 }
 0x2d6   :  { %4373 = vmatpush3.bf16.msra.mxu0 %v5222_v57 }
 0x2d8   :  { %3016 = vmatmul.mubr.bf16.gmra.mrb[80].mxu0 %v5771_v23 }
 0x2d9   :  { %3242 = vmatmul.mubr.bf16.gmra.mrb[80].mxu1 %v5771_v23  ;;  %3025 = vmatprep.mubr.bf16.mxu0 %v5785_v25  ;;  %v5224_v23 = vld [vmem:[#allocation10 + $0xb8] sm:$0xff]  }
 0x2da   :  { %3251 = vmatprep.mubr.bf16.mxu1 %v5785_v25  ;;  %4437 = vmatpush3.bf16.msra.mxu1 %v5224_v23  ;;  %v5850_v25 = vrot.slane %v2168_v38, %v5566_v4 }
 0x2e0   :  { %3026 = vmatmul.mubr.bf16.gmra.mrb[84].mxu0 %v5783_v24 }
 0x2e1   :  { %3252 = vmatmul.mubr.bf16.gmra.mrb[84].mxu1 %v5783_v24  ;;  %3035 = vmatprep.mubr.bf16.mxu0 %v5797_v1  ;;  %v5847_v24 = vrot.slane %v2168_v38, %v5549_v45 }
 0x2e2   :  { %3261 = vmatprep.mubr.bf16.mxu1 %v5797_v1  ;;  %v5856_v1 = vrot.slane %v2168_v38, %v5569_v9 }
 0x2e8   :  { %3036 = vmatmul.mubr.bf16.gmra.mrb[88].mxu0 %v5795_v12 }
 0x2e9   :  { %3262 = vmatmul.mubr.bf16.gmra.mrb[88].mxu1 %v5795_v12  ;;  %3045 = vmatprep.mubr.bf16.mxu0 %v5809_v59  ;;  %v5853_v12 = vrot.slane %v2168_v38, %v5554_v47 }
 0x2ea   :  { %3271 = vmatprep.mubr.bf16.mxu1 %v5809_v59 }
 0x2f0   :  { %3046 = vmatmul.mubr.bf16.gmra.mrb[92].mxu0 %v5807_v62 }
 0x2f1   :  { %3272 = vmatmul.mubr.bf16.gmra.mrb[92].mxu1 %v5807_v62 }
 0x38b   :  { %v2977_v0 = vpop.f32.mrb[64].mxu0 }
 0x38c   :  { %v4550_v42 = vadd.f32 %v2977_v0, %v5847_v24  ;;  %v3203_v43 = vpop.f32.mrb[64].mxu1  ;;  %v2979_v20 = vpop.f32.mrb[65].mxu0 }
 0x38d   :  { %v4582_v3 = vadd.f32 %v3203_v43, %v5850_v25  ;;  %v4551_v46 = vadd.f32 %v2979_v20, %v5853_v12  ;;  %v3205_v45 = vpop.f32.mrb[65].mxu1  ;;  %v2981_v51 = vpop.f32.mrb[66].mxu0 }
 0x38e   :  { %v4583_v4 = vadd.f32 %v3205_v45, %v5856_v1  ;;  %v4552_v52 = vadd.f32 %v2981_v51, %v5847_v24  ;;  %v3207_v47 = vpop.f32.mrb[66].mxu1  ;;  %v2983_v26 = vpop.f32.mrb[67].mxu0  ;;  %v3282_v54 = vmax.f32 %v4550_v42, 0.0 }
 0x38f   :  { %v4584_v9 = vadd.f32 %v3207_v47, %v5850_v25  ;;  %v4553_v27 = vadd.f32 %v2983_v26, %v5853_v12  ;;  %v3209_v53 = vpop.f32.mrb[67].mxu1  ;;  %v3284_v62 = vmax.f32 %v4582_v3, 0.0  ;;  %v3283_v22 = vmax.f32 %v4551_v46, 0.0 }
 0x390   :  { %v3286_v56 = vmax.f32 %v4552_v52, 0.0  ;;  %v4585_v58 = vadd.f32 %v3209_v53, %v5856_v1  ;;  %v3285_v5 = vmax.f32 %v4583_v4, 0.0 }
 0x391   :  { %v3288_v59 = vmax.f32 %v4584_v9, 0.0  ;;  %v3287_v2 = vmax.f32 %v4553_v27, 0.0 }
 0x392   :  { %v3346_v44 = vpack.c.bf16 %v3286_v56, %v3282_v54  ;;  %v3289_v32 = vmax.f32 %v4585_v58, 0.0 }
 0x393   :  { %v3348_v6 = vpack.c.bf16 %v3288_v59, %v3284_v62  ;;  %v3347_v7 = vpack.c.bf16 %v3287_v2, %v3283_v22  ;;  %v2987_v8 = vpop.f32.mrb[68].mxu0 }
 0x394   :  { %v3349_v10 = vpack.c.bf16 %v3289_v32, %v3285_v5  ;;  %v4554_v11 = vadd.f32 %v2987_v8, %v5847_v24  ;;  %v3213_v30 = vpop.f32.mrb[68].mxu1  ;;  %v2989_v14 = vpop.f32.mrb[69].mxu0 }
 0x395   :  { %v4586_v15 = vadd.f32 %v3213_v30, %v5850_v25  ;;  %v4555_v50 = vadd.f32 %v2989_v14, %v5853_v12  ;;  %v3215_v60 = vpop.f32.mrb[69].mxu1  ;;  %v2991_v16 = vpop.f32.mrb[70].mxu0  ;;  %3673 = vmatprep.mubr.bf16.mxu0 %v3347_v7 }
 0x396   :  { %v4587_v18 = vadd.f32 %v3215_v60, %v5856_v1  ;;  %v4556_v19 = vadd.f32 %v2991_v16, %v5847_v24  ;;  %v3217_v21 = vpop.f32.mrb[70].mxu1  ;;  %3770 = vmatprep.mubr.bf16.mxu1 %v3349_v10  ;;  %v2993_v17 = vpop.f32.mrb[71].mxu0  ;;  %3674 = vmatmul.mubr.bf16.vlgmr.msra.gmra.mrb[96].mxu0 %v3346_v44  ;;  %v3290_v41 = vmax.f32 %v4554_v11, 0.0 }
 0x397   :  { %v4588_v55 = vadd.f32 %v3217_v21, %v5850_v25  ;;  %v4557_v34 = vadd.f32 %v2993_v17, %v5853_v12  ;;  %v3219_v48 = vpop.f32.mrb[71].mxu1  ;;  %3771 = vmatmul.mubr.bf16.vlgmr.msra.gmra.mrb[96].mxu1 %v3348_v6  ;;  %v3292_v31 = vmax.f32 %v4586_v15, 0.0  ;;  %v3291_v49 = vmax.f32 %v4555_v50, 0.0 }
 0x398   :  { %v3294_v28 = vmax.f32 %v4556_v19, 0.0  ;;  %v4589_v29 = vadd.f32 %v3219_v48, %v5856_v1  ;;  %v3293_v35 = vmax.f32 %v4587_v18, 0.0 }
 0x399   :  { %v3296_v33 = vmax.f32 %v4588_v55, 0.0  ;;  %v3295_v13 = vmax.f32 %v4557_v34, 0.0 }
 0x39a   :  { %v3350_v36 = vpack.c.bf16 %v3294_v28, %v3290_v41  ;;  %v3297_v39 = vmax.f32 %v4589_v29, 0.0 }
 0x39b   :  { %v3352_v37 = vpack.c.bf16 %v3296_v33, %v3292_v31  ;;  %v3351_v40 = vpack.c.bf16 %v3295_v13, %v3291_v49  ;;  %v2997_v61 = vpop.f32.mrb[72].mxu0 }
 0x39c   :  { %v3353_v63 = vpack.c.bf16 %v3297_v39, %v3293_v35  ;;  %v4558_v57 = vadd.f32 %v2997_v61, %v5847_v24  ;;  %v3223_v23 = vpop.f32.mrb[72].mxu1  ;;  %v2999_v38 = vpop.f32.mrb[73].mxu0 }
 0x39d   :  { %v4590_v0 = vadd.f32 %v3223_v23, %v5850_v25  ;;  %v4559_v42 = vadd.f32 %v2999_v38, %v5853_v12  ;;  %v3225_v43 = vpop.f32.mrb[73].mxu1  ;;  %v3001_v20 = vpop.f32.mrb[74].mxu0  ;;  %3681 = vmatprep.mubr.bf16.mxu0 %v3351_v40 }
 0x39e   :  { %v4591_v3 = vadd.f32 %v3225_v43, %v5856_v1  ;;  %v4560_v46 = vadd.f32 %v3001_v20, %v5847_v24  ;;  %v3227_v45 = vpop.f32.mrb[74].mxu1  ;;  %3778 = vmatprep.mubr.bf16.mxu1 %v3353_v63  ;;  %v3003_v51 = vpop.f32.mrb[75].mxu0  ;;  %3682 = vmatmul.mubr.bf16.gmra.mrb[100].mxu0 %v3350_v36  ;;  %v3298_v26 = vmax.f32 %v4558_v57, 0.0 }
 0x39f   :  { %v4592_v4 = vadd.f32 %v3227_v45, %v5850_v25  ;;  %v4561_v52 = vadd.f32 %v3003_v51, %v5853_v12  ;;  %v3229_v47 = vpop.f32.mrb[75].mxu1  ;;  %3779 = vmatmul.mubr.bf16.gmra.mrb[100].mxu1 %v3352_v37  ;;  %v3300_v53 = vmax.f32 %v4590_v0, 0.0  ;;  %v3299_v54 = vmax.f32 %v4559_v42, 0.0 }
 0x3a0   :  { %v3302_v9 = vmax.f32 %v4560_v46, 0.0  ;;  %v4593_v27 = vadd.f32 %v3229_v47, %v5856_v1  ;;  %v3301_v62 = vmax.f32 %v4591_v3, 0.0 }
 0x3a1   :  { %v3304_v56 = vmax.f32 %v4592_v4, 0.0  ;;  %v3303_v58 = vmax.f32 %v4561_v52, 0.0 }
 0x3a2   :  { %v3354_v22 = vpack.c.bf16 %v3302_v9, %v3298_v26  ;;  %v3305_v59 = vmax.f32 %v4593_v27, 0.0 }
 0x3a3   :  { %v3356_v2 = vpack.c.bf16 %v3304_v56, %v3300_v53  ;;  %v3355_v5 = vpack.c.bf16 %v3303_v58, %v3299_v54  ;;  %v3007_v44 = vpop.f32.mrb[76].mxu0 }
 0x3a4   :  { %v3357_v32 = vpack.c.bf16 %v3305_v59, %v3301_v62  ;;  %v4562_v6 = vadd.f32 %v3007_v44, %v5847_v24  ;;  %v3233_v7 = vpop.f32.mrb[76].mxu1  ;;  %v3009_v8 = vpop.f32.mrb[77].mxu0 }
 0x3a5   :  { %v4594_v10 = vadd.f32 %v3233_v7, %v5850_v25  ;;  %v4563_v11 = vadd.f32 %v3009_v8, %v5853_v12  ;;  %v3235_v30 = vpop.f32.mrb[77].mxu1  ;;  %v3011_v14 = vpop.f32.mrb[78].mxu0  ;;  %3689 = vmatprep.mubr.bf16.mxu0 %v3355_v5 }
 0x3a6   :  { %v4595_v15 = vadd.f32 %v3235_v30, %v5856_v1  ;;  %v4564_v50 = vadd.f32 %v3011_v14, %v5847_v24  ;;  %v3237_v60 = vpop.f32.mrb[78].mxu1  ;;  %3786 = vmatprep.mubr.bf16.mxu1 %v3357_v32  ;;  %v3013_v16 = vpop.f32.mrb[79].mxu0  ;;  %3690 = vmatmul.mubr.bf16.gmra.mrb[104].mxu0 %v3354_v22  ;;  %v3306_v17 = vmax.f32 %v4562_v6, 0.0 }
 0x3a7   :  { %v4596_v18 = vadd.f32 %v3237_v60, %v5850_v25  ;;  %v4565_v19 = vadd.f32 %v3013_v16, %v5853_v12  ;;  %v3239_v21 = vpop.f32.mrb[79].mxu1  ;;  %3787 = vmatmul.mubr.bf16.gmra.mrb[104].mxu1 %v3356_v2  ;;  %v3308_v48 = vmax.f32 %v4594_v10, 0.0  ;;  %v3307_v41 = vmax.f32 %v4563_v11, 0.0 }
 0x3a8   :  { %v3310_v55 = vmax.f32 %v4564_v50, 0.0  ;;  %v4597_v34 = vadd.f32 %v3239_v21, %v5856_v1  ;;  %v3309_v31 = vmax.f32 %v4595_v15, 0.0 }
 0x3a9   :  { %v3312_v28 = vmax.f32 %v4596_v18, 0.0  ;;  %v3311_v29 = vmax.f32 %v4565_v19, 0.0 }
 0x3aa   :  { %v3358_v49 = vpack.c.bf16 %v3310_v55, %v3306_v17  ;;  %v3313_v33 = vmax.f32 %v4597_v34, 0.0 }
 0x3ab   :  { %v3360_v13 = vpack.c.bf16 %v3312_v28, %v3308_v48  ;;  %v3359_v35 = vpack.c.bf16 %v3311_v29, %v3307_v41  ;;  %v3017_v36 = vpop.f32.mrb[80].mxu0 }
 0x3ac   :  { %v3361_v39 = vpack.c.bf16 %v3313_v33, %v3309_v31  ;;  %v4566_v37 = vadd.f32 %v3017_v36, %v5847_v24  ;;  %v3243_v40 = vpop.f32.mrb[80].mxu1  ;;  %v3019_v61 = vpop.f32.mrb[81].mxu0 }
 0x3ad   :  { %v4598_v63 = vadd.f32 %v3243_v40, %v5850_v25  ;;  %v4567_v57 = vadd.f32 %v3019_v61, %v5853_v12  ;;  %v3245_v23 = vpop.f32.mrb[81].mxu1  ;;  %v3021_v38 = vpop.f32.mrb[82].mxu0  ;;  %3697 = vmatprep.mubr.bf16.mxu0 %v3359_v35 }
 0x3ae   :  { %v4599_v0 = vadd.f32 %v3245_v23, %v5856_v1  ;;  %v4568_v42 = vadd.f32 %v3021_v38, %v5847_v24  ;;  %v3247_v43 = vpop.f32.mrb[82].mxu1  ;;  %3794 = vmatprep.mubr.bf16.mxu1 %v3361_v39  ;;  %v3023_v20 = vpop.f32.mrb[83].mxu0  ;;  %3698 = vmatmul.mubr.bf16.gmra.mrb[108].mxu0 %v3358_v49  ;;  %v3314_v51 = vmax.f32 %v4566_v37, 0.0 }
 0x3af   :  { %v4600_v3 = vadd.f32 %v3247_v43, %v5850_v25  ;;  %v4569_v46 = vadd.f32 %v3023_v20, %v5853_v12  ;;  %v3249_v45 = vpop.f32.mrb[83].mxu1  ;;  %3795 = vmatmul.mubr.bf16.gmra.mrb[108].mxu1 %v3360_v13  ;;  %v3316_v47 = vmax.f32 %v4598_v63, 0.0  ;;  %v3315_v26 = vmax.f32 %v4567_v57, 0.0 }
 0x3b0   :  { %v3318_v4 = vmax.f32 %v4568_v42, 0.0  ;;  %v4601_v52 = vadd.f32 %v3249_v45, %v5856_v1  ;;  %v3317_v53 = vmax.f32 %v4599_v0, 0.0 }
 0x3b1   :  { %v3320_v9 = vmax.f32 %v4600_v3, 0.0  ;;  %v3319_v27 = vmax.f32 %v4569_v46, 0.0 }
 0x3b2   :  { %v3362_v54 = vpack.c.bf16 %v3318_v4, %v3314_v51  ;;  %v3321_v56 = vmax.f32 %v4601_v52, 0.0 }
 0x3b3   :  { %v3364_v58 = vpack.c.bf16 %v3320_v9, %v3316_v47  ;;  %v3363_v62 = vpack.c.bf16 %v3319_v27, %v3315_v26  ;;  %v3027_v22 = vpop.f32.mrb[84].mxu0 }
 0x3b4   :  { %v3365_v59 = vpack.c.bf16 %v3321_v56, %v3317_v53  ;;  %v4570_v2 = vadd.f32 %v3027_v22, %v5847_v24  ;;  %v3253_v5 = vpop.f32.mrb[84].mxu1  ;;  %v3029_v44 = vpop.f32.mrb[85].mxu0 }
 0x3b5   :  { %v4602_v32 = vadd.f32 %v3253_v5, %v5850_v25  ;;  %v4571_v6 = vadd.f32 %v3029_v44, %v5853_v12  ;;  %v3255_v7 = vpop.f32.mrb[85].mxu1  ;;  %v3031_v8 = vpop.f32.mrb[86].mxu0  ;;  %3705 = vmatprep.mubr.bf16.mxu0 %v3363_v62 }
 0x3b6   :  { %v4603_v10 = vadd.f32 %v3255_v7, %v5856_v1  ;;  %v4572_v11 = vadd.f32 %v3031_v8, %v5847_v24  ;;  %v3257_v30 = vpop.f32.mrb[86].mxu1  ;;  %3802 = vmatprep.mubr.bf16.mxu1 %v3365_v59  ;;  %v3033_v14 = vpop.f32.mrb[87].mxu0  ;;  %3706 = vmatmul.mubr.bf16.gmra.mrb[112].mxu0 %v3362_v54  ;;  %v3322_v16 = vmax.f32 %v4570_v2, 0.0 }
 0x3b7   :  { %v4604_v15 = vadd.f32 %v3257_v30, %v5850_v25  ;;  %v4573_v50 = vadd.f32 %v3033_v14, %v5853_v12  ;;  %v3259_v60 = vpop.f32.mrb[87].mxu1  ;;  %3803 = vmatmul.mubr.bf16.gmra.mrb[112].mxu1 %v3364_v58  ;;  %v3324_v21 = vmax.f32 %v4602_v32, 0.0  ;;  %v3323_v17 = vmax.f32 %v4571_v6, 0.0 }
 0x3b8   :  { %v3326_v18 = vmax.f32 %v4572_v11, 0.0  ;;  %v4605_v19 = vadd.f32 %v3259_v60, %v5856_v1  ;;  %v3325_v48 = vmax.f32 %v4603_v10, 0.0 }
 0x3b9   :  { %v3328_v55 = vmax.f32 %v4604_v15, 0.0  ;;  %v3327_v34 = vmax.f32 %v4573_v50, 0.0 }
 0x3ba   :  { %v3366_v41 = vpack.c.bf16 %v3326_v18, %v3322_v16  ;;  %v3329_v28 = vmax.f32 %v4605_v19, 0.0 }
 0x3bb   :  { %v3368_v29 = vpack.c.bf16 %v3328_v55, %v3324_v21  ;;  %v3367_v31 = vpack.c.bf16 %v3327_v34, %v3323_v17  ;;  %v3037_v49 = vpop.f32.mrb[88].mxu0 }
 0x3bc   :  { %v3369_v33 = vpack.c.bf16 %v3329_v28, %v3325_v48  ;;  %v4574_v13 = vadd.f32 %v3037_v49, %v5847_v24  ;;  %v3263_v35 = vpop.f32.mrb[88].mxu1  ;;  %v3039_v36 = vpop.f32.mrb[89].mxu0 }
 0x3bd   :  { %v4606_v39 = vadd.f32 %v3263_v35, %v5850_v25  ;;  %v4575_v37 = vadd.f32 %v3039_v36, %v5853_v12  ;;  %v3265_v40 = vpop.f32.mrb[89].mxu1  ;;  %v3041_v61 = vpop.f32.mrb[90].mxu0  ;;  %3713 = vmatprep.mubr.bf16.mxu0 %v3367_v31 }
 0x3be   :  { %v4607_v63 = vadd.f32 %v3265_v40, %v5856_v1  ;;  %v4576_v57 = vadd.f32 %v3041_v61, %v5847_v24  ;;  %v3267_v23 = vpop.f32.mrb[90].mxu1  ;;  %3810 = vmatprep.mubr.bf16.mxu1 %v3369_v33  ;;  %v3043_v38 = vpop.f32.mrb[91].mxu0  ;;  %3714 = vmatmul.mubr.bf16.gmra.mrb[116].mxu0 %v3366_v41  ;;  %v3330_v20 = vmax.f32 %v4574_v13, 0.0 }
 0x3bf   :  { %v4608_v0 = vadd.f32 %v3267_v23, %v5850_v25  ;;  %v4577_v42 = vadd.f32 %v3043_v38, %v5853_v12  ;;  %v3269_v43 = vpop.f32.mrb[91].mxu1  ;;  %3811 = vmatmul.mubr.bf16.gmra.mrb[116].mxu1 %v3368_v29  ;;  %v3332_v45 = vmax.f32 %v4606_v39, 0.0  ;;  %v3331_v51 = vmax.f32 %v4575_v37, 0.0 }
 0x3c0   :  { %v3334_v3 = vmax.f32 %v4576_v57, 0.0  ;;  %v4609_v46 = vadd.f32 %v3269_v43, %v5856_v1  ;;  %v3333_v47 = vmax.f32 %v4607_v63, 0.0 }
 0x3c1   :  { %v3336_v4 = vmax.f32 %v4608_v0, 0.0  ;;  %v3335_v52 = vmax.f32 %v4577_v42, 0.0 }
 0x3c2   :  { %v3370_v26 = vpack.c.bf16 %v3334_v3, %v3330_v20  ;;  %v3337_v9 = vmax.f32 %v4609_v46, 0.0 }
 0x3c3   :  { %v3372_v27 = vpack.c.bf16 %v3336_v4, %v3332_v45  ;;  %v3371_v53 = vpack.c.bf16 %v3335_v52, %v3331_v51  ;;  %v3047_v54 = vpop.f32.mrb[92].mxu0 }
 0x3c4   :  { %v3373_v56 = vpack.c.bf16 %v3337_v9, %v3333_v47  ;;  %v4578_v58 = vadd.f32 %v3047_v54, %v5847_v24  ;;  %v3273_v62 = vpop.f32.mrb[92].mxu1  ;;  %v3049_v22 = vpop.f32.mrb[93].mxu0 }
 0x3c5   :  { %v4610_v59 = vadd.f32 %v3273_v62, %v5850_v25  ;;  %v4579_v2 = vadd.f32 %v3049_v22, %v5853_v12  ;;  %v3275_v5 = vpop.f32.mrb[93].mxu1  ;;  %v3051_v44 = vpop.f32.mrb[94].mxu0  ;;  %3721 = vmatprep.mubr.bf16.mxu0 %v3371_v53 }
 0x3c6   :  { %v4611_v32 = vadd.f32 %v3275_v5, %v5856_v1  ;;  %v4580_v6 = vadd.f32 %v3051_v44, %v5847_v24  ;;  %v3277_v7 = vpop.f32.mrb[94].mxu1  ;;  %3818 = vmatprep.mubr.bf16.mxu1 %v3373_v56  ;;  %v3053_v8 = vpop.f32.mrb[95].mxu0  ;;  %3722 = vmatmul.mubr.bf16.gmra.mrb[120].mxu0 %v3370_v26  ;;  %v3338_v14 = vmax.f32 %v4578_v58, 0.0 }
 0x3c7   :  { %v4612_v10 = vadd.f32 %v3277_v7, %v5850_v25  ;;  %v4581_v11 = vadd.f32 %v3053_v8, %v5853_v12  ;;  %v3279_v30 = vpop.f32.mrb[95].mxu1  ;;  %3819 = vmatmul.mubr.bf16.gmra.mrb[120].mxu1 %v3372_v27  ;;  %v3340_v60 = vmax.f32 %v4610_v59, 0.0  ;;  %v3339_v16 = vmax.f32 %v4579_v2, 0.0 }
 0x3c8   :  { %v3342_v15 = vmax.f32 %v4580_v6, 0.0  ;;  %v4613_v50 = vadd.f32 %v3279_v30, %v5856_v1  ;;  %v3341_v21 = vmax.f32 %v4611_v32, 0.0  ;;  %v5925_v1 = vld [vmem:[%s5966_s8] ss:$0 sm:$0xff]  ;;  %s5407_s8 = smov [#allocation11]  }
 0x3c9   :  { %v3344_v18 = vmax.f32 %v4612_v10, 0.0  ;;  %v3343_v19 = vmax.f32 %v4581_v11, 0.0  ;;  %s3936_s1 = sshll.u32 %s5407_s8, 4  ;;  %s3937_s1 = int_to_ptr.vmem [resolvable:$true] %s3936_s1 }
 0x3ca   :  { %v3374_v24 = vpack.c.bf16 %v3342_v15, %v3338_v14  ;;  %v3345_v17 = vmax.f32 %v4613_v50, 0.0  ;;  %s5367_s10 = scalar_lea.vmem %s3937_s1, 1024  ;;  %p5372_p13 = scmp.lt.s32.totalorder %s3937_s1, %s3937_s1 }
 0x3cb   :  { %v3376_v55 = vpack.c.bf16 %v3344_v18, %v3340_v60  ;;  %v3375_v34 = vpack.c.bf16 %v3343_v19, %v3339_v16  ;;  %p5368_p12 = scmp.ne.s32.totalorder %s3937_s1, %s5367_s10  ;;  %p5373_p0 = scmp.lt.s32.totalorder %s5367_s10, %s5367_s10 }
 0x3cc   :  { %v3377_v48 = vpack.c.bf16 %v3345_v17, %v3341_v21 }
 0x3cd   :  { %3729 = vmatprep.mubr.bf16.mxu0 %v3375_v34  ;;  %p5374_p1 = por %p5373_p0, %p5372_p13 }
 0x3ce   :  { %3826 = vmatprep.mubr.bf16.mxu1 %v3377_v48  ;;  %3730 = vmatmul.mubr.bf16.gmra.mrb[124].mxu0 %v3374_v24 }
 0x3cf   :  { %3827 = vmatmul.mubr.bf16.gmra.mrb[124].mxu1 %v3376_v55  ;;  %p5375_p2 = pnand %p5374_p1, %p5368_p12 }
 0x469   :  { %v4374_v25 = vpop.f32.mrb[96].mxu0 }
 0x46a   :  { %v4438_v12 = vpop.f32.mrb[96].mxu1  ;;  %v4375_v41 = vpop.f32.mrb[97].mxu0 }
 0x46b   :  { %v4376_v28 = vadd.f32 %v4375_v41, %v4374_v25  ;;  %v4439_v29 = vpop.f32.mrb[97].mxu1  ;;  %v4377_v31 = vpop.f32.mrb[98].mxu0 }
 0x46c   :  { %v4440_v49 = vadd.f32 %v4439_v29, %v4438_v12  ;;  %v4441_v33 = vpop.f32.mrb[98].mxu1  ;;  %v4378_v13 = vpop.f32.mrb[99].mxu0 }
 0x46d   :  { %v3676_v35 = vadd.f32 %v4376_v28, %v5925_v1  ;;  %v4379_v36 = vadd.f32 %v4378_v13, %v4377_v31  ;;  %v4442_v39 = vpop.f32.mrb[99].mxu1 }
 0x46e   :  { %v4443_v37 = vadd.f32 %v4442_v39, %v4441_v33 }
 0x46f   :  { %v3773_v40 = vadd.f32 %v4440_v49, %v3676_v35  ;;  %v3679_v61 = vadd.f32 %v4379_v36, %v5925_v1 }
 0x471   :  { %v3776_v63 = vadd.f32 %v4443_v37, %v3679_v61  ;;  %v4380_v57 = vpop.f32.mrb[100].mxu0  ;;  %5225 = vtanh.f32 %v3773_v40 }
 0x472   :  { %v4444_v23 = vpop.f32.mrb[100].mxu1  ;;  %v4381_v38 = vpop.f32.mrb[101].mxu0 }
 0x473   :  { %5227 = vtanh.f32 %v3776_v63  ;;  %v4382_v0 = vadd.f32 %v4381_v38, %v4380_v57  ;;  %v4445_v42 = vpop.f32.mrb[101].mxu1  ;;  %v4383_v43 = vpop.f32.mrb[102].mxu0 }
 0x474   :  { %v4446_v20 = vadd.f32 %v4445_v42, %v4444_v23  ;;  %v4447_v3 = vpop.f32.mrb[102].mxu1  ;;  %v4384_v46 = vpop.f32.mrb[103].mxu0 }
 0x475   :  { %v3684_v45 = vadd.f32 %v4382_v0, %v5925_v1  ;;  %v4385_v51 = vadd.f32 %v4384_v46, %v4383_v43  ;;  %v4448_v4 = vpop.f32.mrb[103].mxu1 }
 0x476   :  { %v4449_v52 = vadd.f32 %v4448_v4, %v4447_v3 }
 0x477   :  { %v3781_v47 = vadd.f32 %v4446_v20, %v3684_v45  ;;  %v3687_v26 = vadd.f32 %v4385_v51, %v5925_v1 }
 0x479   :  { %v3784_v9 = vadd.f32 %v4449_v52, %v3687_v26  ;;  %v4386_v27 = vpop.f32.mrb[104].mxu0  ;;  %5229 = vtanh.f32 %v3781_v47 }
 0x47a   :  { %v4450_v53 = vpop.f32.mrb[104].mxu1  ;;  %v4387_v54 = vpop.f32.mrb[105].mxu0 }
 0x47b   :  { %5231 = vtanh.f32 %v3784_v9  ;;  %v4388_v56 = vadd.f32 %v4387_v54, %v4386_v27  ;;  %v4451_v58 = vpop.f32.mrb[105].mxu1  ;;  %v4389_v62 = vpop.f32.mrb[106].mxu0 }
 0x47c   :  { %v5226_v22 = vpop.eup %5225  ;;  %v4452_v59 = vadd.f32 %v4451_v58, %v4450_v53  ;;  %v4453_v2 = vpop.f32.mrb[106].mxu1 }
 0x47d   :  { %v4390_v5 = vpop.f32.mrb[107].mxu0  ;;  %v5228_v44 = vpop.eup %5227  ;;  %v3692_v32 = vadd.f32 %v4388_v56, %v5925_v1 }
 0x47e   :  { %v4391_v6 = vadd.f32 %v4390_v5, %v4389_v62  ;;  %v4454_v7 = vpop.f32.mrb[107].mxu1  ;;  %v4314_v8 = vpack.c.bf16 %v5228_v44, %v5226_v22 }
 0x47f   :  { %v4455_v10 = vadd.f32 %v4454_v7, %v4453_v2  ;;  %v3789_v11 = vadd.f32 %v4452_v59, %v3692_v32 }
 0x480   :  { %v3695_v30 = vadd.f32 %v4391_v6, %v5925_v1  ;;  %4315 = vst [vmem:[#allocation11] sm:$0xff] %v4314_v8  }
 0x481   :  { %v4392_v15 = vpop.f32.mrb[108].mxu0  ;;  %5233 = vtanh.f32 %v3789_v11 }
 0x482   :  { %v3792_v14 = vadd.f32 %v4455_v10, %v3695_v30  ;;  %v4456_v50 = vpop.f32.mrb[108].mxu1  ;;  %v4393_v60 = vpop.f32.mrb[109].mxu0 }
 0x483   :  { %v4394_v16 = vadd.f32 %v4393_v60, %v4392_v15  ;;  %v4457_v18 = vpop.f32.mrb[109].mxu1  ;;  %v4395_v19 = vpop.f32.mrb[110].mxu0 }
 0x484   :  { %5235 = vtanh.f32 %v3792_v14  ;;  %v5230_v21 = vpop.eup %5229  ;;  %v4458_v24 = vadd.f32 %v4457_v18, %v4456_v50  ;;  %v4459_v17 = vpop.f32.mrb[110].mxu1 }
 0x485   :  { %v4396_v55 = vpop.f32.mrb[111].mxu0  ;;  %v5232_v34 = vpop.eup %5231  ;;  %v3700_v48 = vadd.f32 %v4394_v16, %v5925_v1 }
 0x486   :  { %v4397_v25 = vadd.f32 %v4396_v55, %v4395_v19  ;;  %v4460_v12 = vpop.f32.mrb[111].mxu1  ;;  %v4319_v41 = vpack.c.bf16 %v5232_v34, %v5230_v21 }
 0x487   :  { %v4461_v28 = vadd.f32 %v4460_v12, %v4459_v17  ;;  %v3797_v29 = vadd.f32 %v4458_v24, %v3700_v48 }
 0x488   :  { %v3703_v31 = vadd.f32 %v4397_v25, %v5925_v1  ;;  %4351 = vst [vmem:[#allocation11 + $0x8] sm:$0xff] %v4319_v41  }
 0x489   :  { %v4398_v33 = vpop.f32.mrb[112].mxu0  ;;  %5237 = vtanh.f32 %v3797_v29 }
 0x48a   :  { %v3800_v49 = vadd.f32 %v4461_v28, %v3703_v31  ;;  %v4462_v13 = vpop.f32.mrb[112].mxu1  ;;  %v4399_v35 = vpop.f32.mrb[113].mxu0 }
 0x48b   :  { %v4400_v36 = vadd.f32 %v4399_v35, %v4398_v33  ;;  %v4463_v39 = vpop.f32.mrb[113].mxu1  ;;  %v4401_v37 = vpop.f32.mrb[114].mxu0 }
 0x48c   :  { %5239 = vtanh.f32 %v3800_v49  ;;  %v5234_v40 = vpop.eup %5233  ;;  %v4464_v61 = vadd.f32 %v4463_v39, %v4462_v13  ;;  %v4465_v63 = vpop.f32.mrb[114].mxu1 }
 0x48d   :  { %v4402_v57 = vpop.f32.mrb[115].mxu0  ;;  %v3708_v38 = vadd.f32 %v4400_v36, %v5925_v1  ;;  %v4466_v42 = vpop.f32.mrb[115].mxu1 }
 0x48e   :  { %v5236_v23 = vpop.eup %5235  ;;  %v4403_v0 = vadd.f32 %v4402_v57, %v4401_v37  ;;  %v4467_v20 = vadd.f32 %v4466_v42, %v4465_v63 }
 0x48f   :  { %v4324_v43 = vpack.c.bf16 %v5236_v23, %v5234_v40  ;;  %v3805_v3 = vadd.f32 %v4464_v61, %v3708_v38 }
 0x490   :  { %v3711_v46 = vadd.f32 %v4403_v0, %v5925_v1 }
 0x491   :  { %4352 = vst [vmem:[#allocation11 + $0x10] sm:$0xff] %v4324_v43   ;;  %v4404_v51 = vpop.f32.mrb[116].mxu0  ;;  %5241 = vtanh.f32 %v3805_v3 }
 0x492   :  { %v3808_v45 = vadd.f32 %v4467_v20, %v3711_v46  ;;  %v4468_v4 = vpop.f32.mrb[116].mxu1  ;;  %v4405_v52 = vpop.f32.mrb[117].mxu0 }
 0x493   :  { %v4406_v47 = vadd.f32 %v4405_v52, %v4404_v51  ;;  %v4469_v26 = vpop.f32.mrb[117].mxu1  ;;  %v4407_v9 = vpop.f32.mrb[118].mxu0 }
 0x494   :  { %5243 = vtanh.f32 %v3808_v45  ;;  %v5238_v27 = vpop.eup %5237  ;;  %v4470_v53 = vadd.f32 %v4469_v26, %v4468_v4  ;;  %v4471_v54 = vpop.f32.mrb[118].mxu1 }
 0x495   :  { %v4408_v56 = vpop.f32.mrb[119].mxu0  ;;  %v3716_v62 = vadd.f32 %v4406_v47, %v5925_v1  ;;  %v4472_v59 = vpop.f32.mrb[119].mxu1 }
 0x496   :  { %v5240_v58 = vpop.eup %5239  ;;  %v4409_v22 = vadd.f32 %v4408_v56, %v4407_v9  ;;  %v4473_v5 = vadd.f32 %v4472_v59, %v4471_v54 }
 0x497   :  { %v4329_v2 = vpack.c.bf16 %v5240_v58, %v5238_v27  ;;  %v3813_v44 = vadd.f32 %v4470_v53, %v3716_v62 }
 0x498   :  { %v3719_v32 = vadd.f32 %v4409_v22, %v5925_v1 }
 0x499   :  { %4353 = vst [vmem:[#allocation11 + $0x18] sm:$0xff] %v4329_v2   ;;  %v4410_v7 = vpop.f32.mrb[120].mxu0  ;;  %5245 = vtanh.f32 %v3813_v44 }
 0x49a   :  { %v3816_v6 = vadd.f32 %v4473_v5, %v3719_v32  ;;  %v4474_v8 = vpop.f32.mrb[120].mxu1  ;;  %v4411_v10 = vpop.f32.mrb[121].mxu0 }
 0x49b   :  { %v4412_v11 = vadd.f32 %v4411_v10, %v4410_v7  ;;  %v4475_v30 = vpop.f32.mrb[121].mxu1  ;;  %v4413_v14 = vpop.f32.mrb[122].mxu0 }
 0x49c   :  { %5247 = vtanh.f32 %v3816_v6  ;;  %v5242_v15 = vpop.eup %5241  ;;  %v4476_v50 = vadd.f32 %v4475_v30, %v4474_v8  ;;  %v4477_v60 = vpop.f32.mrb[122].mxu1 }
 0x49d   :  { %v4414_v16 = vpop.f32.mrb[123].mxu0  ;;  %v3724_v19 = vadd.f32 %v4412_v11, %v5925_v1  ;;  %v4478_v24 = vpop.f32.mrb[123].mxu1 }
 0x49e   :  { %v5244_v18 = vpop.eup %5243  ;;  %v4415_v21 = vadd.f32 %v4414_v16, %v4413_v14  ;;  %v4479_v55 = vadd.f32 %v4478_v24, %v4477_v60 }
 0x49f   :  { %v4334_v17 = vpack.c.bf16 %v5244_v18, %v5242_v15  ;;  %v3821_v34 = vadd.f32 %v4476_v50, %v3724_v19 }
 0x4a0   :  { %v3727_v48 = vadd.f32 %v4415_v21, %v5925_v1 }
 0x4a1   :  { %4354 = vst [vmem:[#allocation11 + $0x20] sm:$0xff] %v4334_v17   ;;  %v4416_v12 = vpop.f32.mrb[124].mxu0  ;;  %5249 = vtanh.f32 %v3821_v34 }
 0x4a2   :  { %v3824_v25 = vadd.f32 %v4479_v55, %v3727_v48  ;;  %v4480_v41 = vpop.f32.mrb[124].mxu1  ;;  %v4417_v28 = vpop.f32.mrb[125].mxu0 }
 0x4a3   :  { %v4418_v29 = vadd.f32 %v4417_v28, %v4416_v12  ;;  %v4481_v31 = vpop.f32.mrb[125].mxu1  ;;  %v4419_v49 = vpop.f32.mrb[126].mxu0 }
 0x4a4   :  { %5251 = vtanh.f32 %v3824_v25  ;;  %v5246_v33 = vpop.eup %5245  ;;  %v4482_v13 = vadd.f32 %v4481_v31, %v4480_v41  ;;  %v4483_v35 = vpop.f32.mrb[126].mxu1 }
 0x4a5   :  { %v4420_v36 = vpop.f32.mrb[127].mxu0  ;;  %v3732_v37 = vadd.f32 %v4418_v29, %v5925_v1  ;;  %v4484_v61 = vpop.f32.mrb[127].mxu1 }
 0x4a6   :  { %v5248_v39 = vpop.eup %5247  ;;  %v4421_v40 = vadd.f32 %v4420_v36, %v4419_v49  ;;  %v4485_v57 = vadd.f32 %v4484_v61, %v4483_v35 }
 0x4a7   :  { %v4339_v63 = vpack.c.bf16 %v5248_v39, %v5246_v33  ;;  %v3829_v23 = vadd.f32 %v4482_v13, %v3732_v37 }
 0x4a8   :  { %v3735_v38 = vadd.f32 %v4421_v40, %v5925_v1 }
 0x4a9   :  { %4355 = vst [vmem:[#allocation11 + $0x28] sm:$0xff] %v4339_v63   ;;  %5253 = vtanh.f32 %v3829_v23 }
 0x4aa   :  { %v3832_v0 = vadd.f32 %v4485_v57, %v3735_v38 }
 0x4ab   :  { %v5250_v42 = vpop.eup %5249 }
 0x4ac   :  { %5255 = vtanh.f32 %v3832_v0 }
 0x4ae   :  { %v5252_v43 = vpop.eup %5251 }
 0x4af   :  { %v4344_v20 = vpack.c.bf16 %v5252_v43, %v5250_v42 }
 0x4b1   :  { %4356 = vst [vmem:[#allocation11 + $0x30] sm:$0xff] %v4344_v20  }
 0x4b3   :  { %v5254_v3 = vpop.eup %5253 }
 0x4b6   :  { %v5256_v46 = vpop.eup %5255 }
 0x4b7   :  { %v4349_v45 = vpack.c.bf16 %v5256_v46, %v5254_v3 }
 0x4b9   :  { %4357 = vst [vmem:[#allocation11 + $0x38] sm:$0xff] %v4349_v45  }
 0x4ba   :  { %5378 = shalt.err (!%p5375_p2)
}
 0x4bb   :  { %s5379_s16 = scalar_lea.hbm %s5967_s9, 1024 }
 0x4bc   :  { %p5380_p3 = scmp.ne.s32.totalorder %s5967_s9, %s5379_s16  ;;  %p5383_p4 = scmp.lt.u32.totalorder %s5379_s16, %s5967_s9 }
 0x4be   :  { %p5385_p5 = pnand %p5383_p4, %p5380_p3 }
 0x4c0   :  { %5388 = shalt.err (!%p5385_p5)
}
 0x4c1   :  { %3942 = dma.vmem_to_hbm [thread:$0]  %s3937_s1, 1024, %s5967_s9, [#allocation4], %s5402_s5, %s5402_s5, %s5403_s24  }
 0x4c2   :  { %5395 = dma.done.wait [#allocation4], 1024  }
 0x4c3   :  { %5396 = vsyncadd [#allocation4], 4294966272 }
 0x4c4   :  { %3946 = vsyncpa [#allocation3], 1 }
 0x4c5   :  { %3947 = vsyncpa [#allocation6], 1 }
 0x4c6   :  { %3948 = vsyncpa [#allocation9], 1 }
 0x4c7   :  { %3949 = vsyncpa [#allocation4], 1 }

</bundles_post_ra>
